<compile_context>
chip_gen: v7x
topology: tpu7x:2x2x1
jax: 0.10.0
libtpu: 0.0.40
codegen_flags: <defaults>
</compile_context>

<pallas_src>
import functools

import jax
import jax.numpy as jnp
from jax.experimental import pallas as pl
from jax.experimental.pallas import tpu as pltpu


# ----------------------------------------------------------------------------
# Pallas kernels
# ----------------------------------------------------------------------------
def aux_pool_kernel(x_ref, w1_ref, b1_ref, w2_ref, b2_ref,
                    aux_ref, pool_ref, *, W, Hout, Wout, M):
    """Fused (all 16 AuxConv heads: conv(3,1)-relu-conv(1,3)-relu-crop) +
    adaptive avg pool for one sample, channels-last.

    x_ref   : (1, H*W, C)        bf16  spatial on sublanes, channels on lanes
    w1_ref  : (C, 3*M)           bf16  stacked Conv2d(C, c_tag, (3,1)), kh-blocks
    b1_ref  : (1, M)             f32
    w2_ref  : (3, M, M)          bf16  block-diag Conv2d(c_tag, c_tag, (1,3)),
                                       transposed for right-multiplication
    b2_ref  : (1, M)             f32
    aux_ref : (1, Hout*Wout, M)  bf16  lane-dense, spatial-major / channel-minor
    pool_ref: (1, 1, C)          bf16  adaptive average pool to 1x1
    """
    HW = x_ref.shape[1]
    L = Hout * W            # rows after the (3,1) conv (W not yet cropped)
    Lt = L - 2              # rows holding every (1,3)-conv output (pre W-crop)

    x = x_ref[0]            # (HW, C) bf16
    b1 = b1_ref[...]        # (1, M)  f32
    b2 = b2_ref[...]        # (1, M)  f32

    # -- Conv2d(C, c_tag, (3,1)) for all 16 heads: ONE (HW,C)x(C,3M) matmul.
    # The 3 kh taps land in 128-lane column blocks; combine them by shifting
    # the small f32 result along sublanes (cheaper than shifting x itself).
    y_all = jnp.dot(x, w1_ref[...], preferred_element_type=jnp.float32)
    y = (y_all[0:L, 0:M]
         + y_all[W:W + L, M:2 * M]
         + y_all[2 * W:2 * W + L, 2 * M:3 * M])
    y = jnp.maximum(y + b1, 0.0).astype(jnp.bfloat16)           # (L, M)

    # -- Conv2d(c_tag, c_tag, (1,3)): 3 block-diagonal (M,M) matmuls; taps are
    # sublane shifts of the f32 outputs (odd shifts of packed bf16 would need
    # repacking, so we shift post-matmul f32 instead).
    z0 = jnp.dot(y, w2_ref[0], preferred_element_type=jnp.float32)
    z1 = jnp.dot(y, w2_ref[1], preferred_element_type=jnp.float32)
    z2 = jnp.dot(y, w2_ref[2], preferred_element_type=jnp.float32)
    acc = z0[0:Lt, :] + z1[1:1 + Lt, :] + z2[2:2 + Lt, :] + b2
    acc = jnp.maximum(acc, 0.0)                                  # (Lt, M) f32

    # -- W-crop: drop the 2 invalid trailing columns of every output row.
    # Every store writes full 128-lane rows (lane-dense); the fc weight rows
    # were permuted at prep time to this (h, w)-major / channel-minor order.
    for h in range(Hout):
        aux_ref[0, h * Wout:(h + 1) * Wout, :] = (
            acc[h * W:h * W + Wout, :].astype(jnp.bfloat16))

    # -- fused adaptive average pool to 1x1 on the MXU (f32 accumulation).
    ones_row = jnp.ones((1, HW), jnp.bfloat16)
    pool = jnp.dot(ones_row, x, preferred_element_type=jnp.float32)
    pool_ref[0] = (pool * (1.0 / HW)).astype(jnp.bfloat16)


def fc_kernel(aux_ref, pool_ref, wa_ref, wp_ref, b_ref, o_ref):
    """One contiguous output-row slab of the final Linear (split-K):
       out[:, j-slab] = aux @ Wa_slab.T + pooled @ Wp_slab.T + b_slab."""
    dn = (((1,), (1,)), ((), ()))          # contract the K (minor) dims
    acc = jax.lax.dot_general(aux_ref[...], wa_ref[...], dn,
                              preferred_element_type=jnp.float32)
    acc = acc + jax.lax.dot_general(pool_ref[...], wp_ref[...], dn,
                                    preferred_element_type=jnp.float32)
    o_ref[...] = acc + b_ref[...]


# ----------------------------------------------------------------------------
# VMEM budget / tiling helpers (generation-aware)
# ----------------------------------------------------------------------------
def _vmem_budget_bytes():
    """~96 MiB on v5e/v6e (128 MiB physical), ~48 MiB on v7x (64 MiB physical);
    conservative v7x-sized fallback if the hardware query is unavailable."""
    cap = 64 * 1024 * 1024
    try:
        info_cap = int(pltpu.get_tpu_info().vmem_capacity_bytes)
        if info_cap >= 16 * 1024 * 1024:
            cap = info_cap
    except Exception:
        pass
    return min((cap * 3) // 4, 100 * 1024 * 1024)


def _fc_out_tile(f_aux, c_pool, n, o_dim, budget):
    """Largest output-row slab (tn) whose double-buffered bf16 weight slabs
    plus resident features / bias / output blocks fit the VMEM budget."""
    if o_dim % 128 != 0:
        return o_dim                          # small / toy case: single block
    per_col = 2 * (f_aux + c_pool)            # bf16 weight bytes per out column
    resident = n * (f_aux + c_pool) * 2       # feats stay resident in VMEM
    for tn in (2048, 1024, 512, 256, 128):
        if o_dim % tn != 0:
            continue
        need = 2 * tn * per_col + 2 * tn * (4 + 4 * n) + resident
        if need <= (budget * 9) // 10:
            return tn
    return 128


# ----------------------------------------------------------------------------
# One-time parameter layout conversion (kernel-friendly, bf16 MXU operands)
# ----------------------------------------------------------------------------
def prepare_params(params):
    w1, b1 = params["aux_w1"], params["aux_b1"]      # (A,3,c,C), (A,c,1)
    w2, b2 = params["aux_w2"], params["aux_b2"]      # (A,3,c,c), (A,c,1)
    fc_wt, fc_b = params["fc_wt"], params["fc_b"]    # (F,O), (1,O)

    A, _, c_tag, C = w1.shape
    M = A * c_tag                                    # 16 * 8 = 128 stacked lanes
    F, O = fc_wt.shape
    Fsp = (F - C) // M                               # Hout * Wout

    # conv(3,1): (C, 3M); column index = kh*M + (a*c_tag + co).
    w1T = (jnp.transpose(w1, (1, 0, 2, 3)).reshape(3 * M, C).T
           .astype(jnp.bfloat16))
    b1r = b1.reshape(1, M).astype(jnp.float32)

    # conv(1,3): block-diagonal (M, M) per tap, transposed for right-multiply.
    blk = jnp.transpose(w2, (1, 0, 2, 3))            # (3, A, c, c)
    eye = jnp.eye(A, dtype=w2.dtype)
    w2bd = (blk[:, :, :, None, :] * eye[None, :, None, :, None]
            ).reshape(3, M, M)
    w2T = jnp.transpose(w2bd, (0, 2, 1)).astype(jnp.bfloat16)
    b2r = b2.reshape(1, M).astype(jnp.float32)

    # fc: stored transposed (O, F) for contiguous row-slab streaming; the aux
    # rows are additionally permuted from torch's (m, s) order to the kernel's
    # channels-last (s, m) order.  Done once, outside the forward pass.
    wa = fc_wt[:M * Fsp].reshape(M, Fsp, O)
    fc_wa = (jnp.transpose(wa, (2, 1, 0)).reshape(O, Fsp * M)
             .astype(jnp.bfloat16))                               # (O, Fsp*M)
    fc_wp = jnp.transpose(fc_wt[M * Fsp:]).astype(jnp.bfloat16)   # (O, C)
    return dict(w1T=w1T, b1=b1r, w2T=w2T, b2=b2r,
                fc_wa=fc_wa, fc_wp=fc_wp, fc_b=fc_b.astype(jnp.float32))


# ----------------------------------------------------------------------------
# Wrapper
# ----------------------------------------------------------------------------
def den_forward(x_nchw, prep):
    N, C, H, W = x_nchw.shape
    Hout, Wout = H - 2, W - 2
    HW, Fsp = H * W, Hout * Wout
    M = prep["b1"].shape[1]

    budget = _vmem_budget_bytes()

    # channels-last bf16 feature map: (N, H*W, C) -- MXU operand layout.
    # NOTE: the pool is computed from bf16 x (f32 accumulation); tiny
    # systematic rounding vs. the f32 reference pool.
    x_t = jnp.transpose(x_nchw, (0, 2, 3, 1)).reshape(N, HW, C)
    x_t = x_t.astype(jnp.bfloat16)

    # --- fused: 16 AuxConv heads + adaptive avg pool, grid over samples -----
    aux_out, pooled = pl.pallas_call(
        functools.partial(aux_pool_kernel, W=W, Hout=Hout, Wout=Wout, M=M),
        out_shape=(
            jax.ShapeDtypeStruct((N, Fsp, M), jnp.bfloat16),
            jax.ShapeDtypeStruct((N, 1, C), jnp.bfloat16),
        ),
        grid_spec=pltpu.PrefetchScalarGridSpec(
            num_scalar_prefetch=0,
            grid=(N,),
            in_specs=[
                pl.BlockSpec((1, HW, C), lambda n: (n, 0, 0)),
                pl.BlockSpec((C, 3 * M), lambda n: (0, 0)),    # stays resident
                pl.BlockSpec((1, M), lambda n: (0, 0)),
                pl.BlockSpec((3, M, M), lambda n: (0, 0, 0)),  # stays resident
                pl.BlockSpec((1, M), lambda n: (0, 0)),
            ],
            out_specs=[
                pl.BlockSpec((1, Fsp, M), lambda n: (n, 0, 0)),
                pl.BlockSpec((1, 1, C), lambda n: (n, 0, 0)),
            ],
        ),
        compiler_params=pltpu.CompilerParams(
            dimension_semantics=("parallel",),
            vmem_limit_bytes=budget),
    )(x_t, prep["w1T"], prep["b1"], prep["w2T"], prep["b2"])

    # Both fc inputs are already bf16 and in the fc weight's K order: only
    # free reshapes remain (no concat / cast HBM round trip over feats).
    aux_flat = aux_out.reshape(N, Fsp * M)
    pooled2d = pooled.reshape(N, C)

    # --- final fc: stream the transposed (O, F) weight in contiguous slabs --
    fc_wa, fc_wp, fc_b = prep["fc_wa"], prep["fc_wp"], prep["fc_b"]
    O, Faux = fc_wa.shape
    tn = _fc_out_tile(Faux, C, N, O, budget)

    out = pl.pallas_call(
        fc_kernel,
        out_shape=jax.ShapeDtypeStruct((N, O), jnp.float32),
        grid_spec=pltpu.PrefetchScalarGridSpec(
            num_scalar_prefetch=0,
            grid=(O // tn,),
            in_specs=[
                pl.BlockSpec((N, Faux), lambda j: (0, 0)),     # feats resident
                pl.BlockSpec((N, C), lambda j: (0, 0)),        # pooled resident
                pl.BlockSpec((tn, Faux), lambda j: (j, 0)),    # contiguous slab
                pl.BlockSpec((tn, C), lambda j: (j, 0)),       # contiguous slab
                pl.BlockSpec((1, tn), lambda j: (0, j)),
            ],
            out_specs=pl.BlockSpec((N, tn), lambda j: (0, j)),
        ),
        compiler_params=pltpu.CompilerParams(
            dimension_semantics=("parallel",),
            vmem_limit_bytes=budget),
        cost_estimate=pl.CostEstimate(
            flops=2 * N * (Faux + C) * O,
            transcendentals=0,
            bytes_accessed=((Faux + C) * O * 2 + N * (Faux + C) * 2
                            + N * O * 4)),
    )(aux_flat, pooled2d, fc_wa, fc_wp, fc_b)
    return out


# ----------------------------------------------------------------------------
# Pure-JAX f32 reference (correctness check of the Pallas path)
# ----------------------------------------------------------------------------
def den_reference(x, params):
    N = x.shape[0]
    dn = ("NCHW", "OIHW", "NCHW")
    outs = []
    for a in range(params["aux_w1"].shape[0]):
        w1 = jnp.transpose(params["aux_w1"][a], (1, 2, 0))[:, :, :, None]
        w2 = jnp.transpose(params["aux_w2"][a], (1, 2, 0))[:, :, None, :]
        b1 = params["aux_b1"][a][:, 0]
        b2 = params["aux_b2"][a][:, 0]
        y = jax.lax.conv_general_dilated(x, w1, (1, 1), "VALID",
                                         dimension_numbers=dn)
        y = jax.nn.relu(y + b1[None, :, None, None])
        y = jax.lax.conv_general_dilated(y, w2, (1, 1), "VALID",
                                         dimension_numbers=dn)
        y = jax.nn.relu(y + b2[None, :, None, None])
        outs.append(y.reshape(N, -1))
    outs.append(jnp.mean(x, axis=(2, 3)))
    feats = jnp.concatenate(outs, axis=1)
    return feats @ params["fc_wt"] + params["fc_b"]


# ----------------------------------------------------------------------------
# Deterministic parameter init (xavier-uniform weights, small-uniform biases)
# ----------------------------------------------------------------------------
def init_params(key, *, num_aux, C, c_tag, Hout, Wout, fc_out):
    def xavier(k, shape, fan_in, fan_out):
        bound = (6.0 / (fan_in + fan_out)) ** 0.5
        return jax.random.uniform(k, shape, jnp.float32, -bound, bound)

    ks = jax.random.split(key, 6)
    f_total = num_aux * c_tag * Hout * Wout + C
    return dict(
        aux_w1=xavier(ks[0], (num_aux, 3, c_tag, C), C * 3, c_tag * 3),
        aux_b1=jax.random.uniform(ks[1], (num_aux, c_tag, 1), jnp.float32,
                                  -0.1, 0.1),
        aux_w2=xavier(ks[2], (num_aux, 3, c_tag, c_tag), c_tag * 3, c_tag * 3),
        aux_b2=jax.random.uniform(ks[3], (num_aux, c_tag, 1), jnp.float32,
                                  -0.1, 0.1),
        fc_wt=xavier(ks[4], (f_total, fc_out), f_total, fc_out),
        fc_b=jax.random.uniform(ks[5], (1, fc_out), jnp.float32, -0.01, 0.01),
    )


if __name__ == "__main__":
    # Small shapes standing in for the real DEN sizes
    # (C=32 stands in for 1024 backbone channels, fc_out=64 for 128*416).
    N, C, H, W = 2, 32, 8, 8
    num_aux, c_tag, fc_out = 16, 8, 64
    Hout, Wout = H - 2, W - 2

    key = jax.random.PRNGKey(0)
    kx, kp = jax.random.split(key)
    x = jax.random.normal(kx, (N, C, H, W), jnp.float32)
    params = init_params(kp, num_aux=num_aux, C=C, c_tag=c_tag,
                         Hout=Hout, Wout=Wout, fc_out=fc_out)

    prep = prepare_params(params)          # one-time layout conversion
    out = jax.jit(den_forward)(x, prep)
    out = jax.block_until_ready(out)

    ref = den_reference(x, params)
    assert out.shape == (N, fc_out), out.shape
    # bf16 MXU operands -> slightly looser tolerance than pure f32.
    assert jnp.allclose(out, ref, rtol=2e-2, atol=5e-2), (
        float(jnp.max(jnp.abs(out - ref))))

    print("KERNEL_OK")
</pallas_src>

<mosaic_0001>
module attributes {stable_mosaic.version = 11 : i64} {
  func.func @aux_pool_kernel(%arg0: i32, %arg1: memref<1x64x32xbf16, #tpu.memory_space<vmem>>, %arg2: memref<32x384xbf16, #tpu.memory_space<vmem>>, %arg3: memref<1x128xf32, #tpu.memory_space<vmem>>, %arg4: memref<3x128x128xbf16, #tpu.memory_space<vmem>>, %arg5: memref<1x128xf32, #tpu.memory_space<vmem>>, %arg6: memref<1x36x128xbf16, #tpu.memory_space<vmem>>, %arg7: memref<1x1x32xbf16, #tpu.memory_space<vmem>>) attributes {dimension_semantics = [#tpu.dimension_semantics<parallel>], iteration_bounds = array<i64: 2>, scalar_prefetch = 0 : i64, scratch_operands = 0 : i64, tpu.core_type = #tpu.core_type<tc>, window_params = [{transform_indices = @transform_0, window_bounds = array<i64: 1, 64, 32>}, {pipeline_mode = #tpu.pipeline_mode<synchronous>, transform_indices = @transform_1, window_bounds = array<i64: 32, 384>}, {pipeline_mode = #tpu.pipeline_mode<synchronous>, transform_indices = @transform_2, window_bounds = array<i64: 1, 128>}, {pipeline_mode = #tpu.pipeline_mode<synchronous>, transform_indices = @transform_3, window_bounds = array<i64: 3, 128, 128>}, {pipeline_mode = #tpu.pipeline_mode<synchronous>, transform_indices = @transform_4, window_bounds = array<i64: 1, 128>}, {transform_indices = @transform_5, window_bounds = array<i64: 1, 36, 128>}, {transform_indices = @transform_6, window_bounds = array<i64: 1, 1, 32>}]} {
    %c0 = arith.constant 0 : index
    %c0_0 = arith.constant 0 : index
    %c0_1 = arith.constant 0 : index
    %0 = vector.load %arg1[%c0, %c0_0, %c0_1] : memref<1x64x32xbf16, #tpu.memory_space<vmem>>, vector<1x64x32xbf16>
    %1 = vector.shape_cast %0 : vector<1x64x32xbf16> to vector<64x32xbf16>
    %c0_2 = arith.constant 0 : index
    %c0_3 = arith.constant 0 : index
    %2 = vector.load %arg3[%c0_2, %c0_3] : memref<1x128xf32, #tpu.memory_space<vmem>>, vector<1x128xf32>
    %c0_4 = arith.constant 0 : index
    %c0_5 = arith.constant 0 : index
    %3 = vector.load %arg5[%c0_4, %c0_5] : memref<1x128xf32, #tpu.memory_space<vmem>>, vector<1x128xf32>
    %c0_6 = arith.constant 0 : index
    %c0_7 = arith.constant 0 : index
    %4 = vector.load %arg2[%c0_6, %c0_7] : memref<32x384xbf16, #tpu.memory_space<vmem>>, vector<32x384xbf16>
    %cst = arith.constant dense<0.000000e+00> : vector<64x384xf32>
    %5 = tpu.matmul %1, %4, %cst {dimension_numbers = #tpu.dot_dimension_numbers<[1], [0], [0], [1], [0, 0, 1, 1], [], []>} : vector<64x32xbf16>, vector<32x384xbf16>, vector<64x384xf32> -> vector<64x384xf32>
    %6 = vector.extract_strided_slice %5 {offsets = [0, 0], sizes = [48, 128], strides = [1, 1]} : vector<64x384xf32> to vector<48x128xf32>
    %7 = vector.extract_strided_slice %5 {offsets = [8, 128], sizes = [48, 128], strides = [1, 1]} : vector<64x384xf32> to vector<48x128xf32>
    %8 = arith.addf %6, %7 : vector<48x128xf32>
    %9 = vector.extract_strided_slice %5 {offsets = [16, 256], sizes = [48, 128], strides = [1, 1]} : vector<64x384xf32> to vector<48x128xf32>
    %10 = arith.addf %8, %9 : vector<48x128xf32>
    %11 = vector.broadcast %2 : vector<1x128xf32> to vector<48x128xf32>
    %12 = arith.addf %10, %11 : vector<48x128xf32>
    %cst_8 = arith.constant 0.000000e+00 : f32
    %13 = vector.broadcast %cst_8 : f32 to vector<48x128xf32>
    %14 = arith.maximumf %12, %13 : vector<48x128xf32>
    %15 = arith.truncf %14 : vector<48x128xf32> to vector<48x128xbf16>
    %c0_9 = arith.constant 0 : index
    %c0_10 = arith.constant 0 : index
    %c0_11 = arith.constant 0 : index
    %16 = vector.load %arg4[%c0_9, %c0_10, %c0_11] : memref<3x128x128xbf16, #tpu.memory_space<vmem>>, vector<1x128x128xbf16>
    %17 = vector.shape_cast %16 : vector<1x128x128xbf16> to vector<128x128xbf16>
    %cst_12 = arith.constant dense<0.000000e+00> : vector<48x128xf32>
    %18 = tpu.matmul %15, %17, %cst_12 {dimension_numbers = #tpu.dot_dimension_numbers<[1], [0], [0], [1], [0, 0, 1, 1], [], []>} : vector<48x128xbf16>, vector<128x128xbf16>, vector<48x128xf32> -> vector<48x128xf32>
    %c1 = arith.constant 1 : index
    %c0_13 = arith.constant 0 : index
    %c0_14 = arith.constant 0 : index
    %19 = vector.load %arg4[%c1, %c0_13, %c0_14] : memref<3x128x128xbf16, #tpu.memory_space<vmem>>, vector<1x128x128xbf16>
    %20 = vector.shape_cast %19 : vector<1x128x128xbf16> to vector<128x128xbf16>
    %cst_15 = arith.constant dense<0.000000e+00> : vector<48x128xf32>
    %21 = tpu.matmul %15, %20, %cst_15 {dimension_numbers = #tpu.dot_dimension_numbers<[1], [0], [0], [1], [0, 0, 1, 1], [], []>} : vector<48x128xbf16>, vector<128x128xbf16>, vector<48x128xf32> -> vector<48x128xf32>
    %c2 = arith.constant 2 : index
    %c0_16 = arith.constant 0 : index
    %c0_17 = arith.constant 0 : index
    %22 = vector.load %arg4[%c2, %c0_16, %c0_17] : memref<3x128x128xbf16, #tpu.memory_space<vmem>>, vector<1x128x128xbf16>
    %23 = vector.shape_cast %22 : vector<1x128x128xbf16> to vector<128x128xbf16>
    %cst_18 = arith.constant dense<0.000000e+00> : vector<48x128xf32>
    %24 = tpu.matmul %15, %23, %cst_18 {dimension_numbers = #tpu.dot_dimension_numbers<[1], [0], [0], [1], [0, 0, 1, 1], [], []>} : vector<48x128xbf16>, vector<128x128xbf16>, vector<48x128xf32> -> vector<48x128xf32>
    %25 = vector.extract_strided_slice %18 {offsets = [0, 0], sizes = [46, 128], strides = [1, 1]} : vector<48x128xf32> to vector<46x128xf32>
    %26 = vector.extract_strided_slice %21 {offsets = [1, 0], sizes = [46, 128], strides = [1, 1]} : vector<48x128xf32> to vector<46x128xf32>
    %27 = arith.addf %25, %26 : vector<46x128xf32>
    %28 = vector.extract_strided_slice %24 {offsets = [2, 0], sizes = [46, 128], strides = [1, 1]} : vector<48x128xf32> to vector<46x128xf32>
    %29 = arith.addf %27, %28 : vector<46x128xf32>
    %30 = vector.broadcast %3 : vector<1x128xf32> to vector<46x128xf32>
    %31 = arith.addf %29, %30 : vector<46x128xf32>
    %cst_19 = arith.constant 0.000000e+00 : f32
    %32 = vector.broadcast %cst_19 : f32 to vector<46x128xf32>
    %33 = arith.maximumf %31, %32 : vector<46x128xf32>
    %34 = vector.extract_strided_slice %33 {offsets = [0, 0], sizes = [6, 128], strides = [1, 1]} : vector<46x128xf32> to vector<6x128xf32>
    %35 = arith.truncf %34 : vector<6x128xf32> to vector<6x128xbf16>
    %c0_20 = arith.constant 0 : index
    %c0_21 = arith.constant 0 : index
    %c0_22 = arith.constant 0 : index
    %36 = vector.load %arg6[%c0_20, %c0_21, %c0_22] : memref<1x36x128xbf16, #tpu.memory_space<vmem>>, vector<1x6x128xbf16>
    %37 = vector.shape_cast %36 : vector<1x6x128xbf16> to vector<6x128xbf16>
    %38 = vector.shape_cast %35 : vector<6x128xbf16> to vector<1x6x128xbf16>
    tpu.vector_store %arg6[%c0_20, %c0_21, %c0_22], %38 {strides = array<i32>} : memref<1x36x128xbf16, #tpu.memory_space<vmem>>, vector<1x6x128xbf16>,
    %39 = vector.extract_strided_slice %33 {offsets = [8, 0], sizes = [6, 128], strides = [1, 1]} : vector<46x128xf32> to vector<6x128xf32>
    %40 = arith.truncf %39 : vector<6x128xf32> to vector<6x128xbf16>
    %c0_23 = arith.constant 0 : index
    %c6 = arith.constant 6 : index
    %c0_24 = arith.constant 0 : index
    %41 = vector.load %arg6[%c0_23, %c6, %c0_24] : memref<1x36x128xbf16, #tpu.memory_space<vmem>>, vector<1x6x128xbf16>
    %42 = vector.shape_cast %41 : vector<1x6x128xbf16> to vector<6x128xbf16>
    %43 = vector.shape_cast %40 : vector<6x128xbf16> to vector<1x6x128xbf16>
    tpu.vector_store %arg6[%c0_23, %c6, %c0_24], %43 {strides = array<i32>} : memref<1x36x128xbf16, #tpu.memory_space<vmem>>, vector<1x6x128xbf16>,
    %44 = vector.extract_strided_slice %33 {offsets = [16, 0], sizes = [6, 128], strides = [1, 1]} : vector<46x128xf32> to vector<6x128xf32>
    %45 = arith.truncf %44 : vector<6x128xf32> to vector<6x128xbf16>
    %c0_25 = arith.constant 0 : index
    %c12 = arith.constant 12 : index
    %c0_26 = arith.constant 0 : index
    %46 = vector.load %arg6[%c0_25, %c12, %c0_26] : memref<1x36x128xbf16, #tpu.memory_space<vmem>>, vector<1x6x128xbf16>
    %47 = vector.shape_cast %46 : vector<1x6x128xbf16> to vector<6x128xbf16>
    %48 = vector.shape_cast %45 : vector<6x128xbf16> to vector<1x6x128xbf16>
    tpu.vector_store %arg6[%c0_25, %c12, %c0_26], %48 {strides = array<i32>} : memref<1x36x128xbf16, #tpu.memory_space<vmem>>, vector<1x6x128xbf16>,
    %49 = vector.extract_strided_slice %33 {offsets = [24, 0], sizes = [6, 128], strides = [1, 1]} : vector<46x128xf32> to vector<6x128xf32>
    %50 = arith.truncf %49 : vector<6x128xf32> to vector<6x128xbf16>
    %c0_27 = arith.constant 0 : index
    %c18 = arith.constant 18 : index
    %c0_28 = arith.constant 0 : index
    %51 = vector.load %arg6[%c0_27, %c18, %c0_28] : memref<1x36x128xbf16, #tpu.memory_space<vmem>>, vector<1x6x128xbf16>
    %52 = vector.shape_cast %51 : vector<1x6x128xbf16> to vector<6x128xbf16>
    %53 = vector.shape_cast %50 : vector<6x128xbf16> to vector<1x6x128xbf16>
    tpu.vector_store %arg6[%c0_27, %c18, %c0_28], %53 {strides = array<i32>} : memref<1x36x128xbf16, #tpu.memory_space<vmem>>, vector<1x6x128xbf16>,
    %54 = vector.extract_strided_slice %33 {offsets = [32, 0], sizes = [6, 128], strides = [1, 1]} : vector<46x128xf32> to vector<6x128xf32>
    %55 = arith.truncf %54 : vector<6x128xf32> to vector<6x128xbf16>
    %c0_29 = arith.constant 0 : index
    %c24 = arith.constant 24 : index
    %c0_30 = arith.constant 0 : index
    %56 = vector.load %arg6[%c0_29, %c24, %c0_30] : memref<1x36x128xbf16, #tpu.memory_space<vmem>>, vector<1x6x128xbf16>
    %57 = vector.shape_cast %56 : vector<1x6x128xbf16> to vector<6x128xbf16>
    %58 = vector.shape_cast %55 : vector<6x128xbf16> to vector<1x6x128xbf16>
    tpu.vector_store %arg6[%c0_29, %c24, %c0_30], %58 {strides = array<i32>} : memref<1x36x128xbf16, #tpu.memory_space<vmem>>, vector<1x6x128xbf16>,
    %59 = vector.extract_strided_slice %33 {offsets = [40, 0], sizes = [6, 128], strides = [1, 1]} : vector<46x128xf32> to vector<6x128xf32>
    %60 = arith.truncf %59 : vector<6x128xf32> to vector<6x128xbf16>
    %c0_31 = arith.constant 0 : index
    %c30 = arith.constant 30 : index
    %c0_32 = arith.constant 0 : index
    %61 = vector.load %arg6[%c0_31, %c30, %c0_32] : memref<1x36x128xbf16, #tpu.memory_space<vmem>>, vector<1x6x128xbf16>
    %62 = vector.shape_cast %61 : vector<1x6x128xbf16> to vector<6x128xbf16>
    %63 = vector.shape_cast %60 : vector<6x128xbf16> to vector<1x6x128xbf16>
    tpu.vector_store %arg6[%c0_31, %c30, %c0_32], %63 {strides = array<i32>} : memref<1x36x128xbf16, #tpu.memory_space<vmem>>, vector<1x6x128xbf16>,
    %cst_33 = arith.constant 1.000000e+00 : bf16
    %64 = vector.broadcast %cst_33 : bf16 to vector<1x64xbf16>
    %cst_34 = arith.constant dense<0.000000e+00> : vector<1x32xf32>
    %65 = tpu.matmul %64, %1, %cst_34 {dimension_numbers = #tpu.dot_dimension_numbers<[1], [0], [0], [1], [0, 0, 1, 1], [], []>} : vector<1x64xbf16>, vector<64x32xbf16>, vector<1x32xf32> -> vector<1x32xf32>
    %cst_35 = arith.constant 1.562500e-02 : f32
    %66 = vector.broadcast %cst_35 : f32 to vector<1x32xf32>
    %67 = arith.mulf %65, %66 : vector<1x32xf32>
    %68 = arith.truncf %67 : vector<1x32xf32> to vector<1x32xbf16>
    %c0_36 = arith.constant 0 : index
    %c0_37 = arith.constant 0 : index
    %c0_38 = arith.constant 0 : index
    %69 = vector.load %arg7[%c0_36, %c0_37, %c0_38] : memref<1x1x32xbf16, #tpu.memory_space<vmem>>, vector<1x1x32xbf16>
    %70 = vector.shape_cast %69 : vector<1x1x32xbf16> to vector<1x32xbf16>
    %71 = vector.shape_cast %68 : vector<1x32xbf16> to vector<1x1x32xbf16>
    tpu.vector_store %arg7[%c0_36, %c0_37, %c0_38], %71 {strides = array<i32>} : memref<1x1x32xbf16, #tpu.memory_space<vmem>>, vector<1x1x32xbf16>,
    return
  }
  func.func @transform_0(%arg0: i32) -> (i32, i32, i32) {
    %c0_i32 = arith.constant 0 : i32
    %c0_i32_0 = arith.constant 0 : i32
    %c0_i32_1 = arith.constant 0 : i32
    return %arg0, %c0_i32, %c0_i32_0 : i32, i32, i32
  }
  func.func @transform_1(%arg0: i32) -> (i32, i32) {
    %c0_i32 = arith.constant 0 : i32
    %c0_i32_0 = arith.constant 0 : i32
    %c0_i32_1 = arith.constant 0 : i32
    return %c0_i32, %c0_i32_0 : i32, i32
  }
  func.func @transform_2(%arg0: i32) -> (i32, i32) {
    %c0_i32 = arith.constant 0 : i32
    %c0_i32_0 = arith.constant 0 : i32
    %c0_i32_1 = arith.constant 0 : i32
    return %c0_i32, %c0_i32_0 : i32, i32
  }
  func.func @transform_3(%arg0: i32) -> (i32, i32, i32) {
    %c0_i32 = arith.constant 0 : i32
    %c0_i32_0 = arith.constant 0 : i32
    %c0_i32_1 = arith.constant 0 : i32
    %c0_i32_2 = arith.constant 0 : i32
    return %c0_i32, %c0_i32_0, %c0_i32_1 : i32, i32, i32
  }
  func.func @transform_4(%arg0: i32) -> (i32, i32) {
    %c0_i32 = arith.constant 0 : i32
    %c0_i32_0 = arith.constant 0 : i32
    %c0_i32_1 = arith.constant 0 : i32
    return %c0_i32, %c0_i32_0 : i32, i32
  }
  func.func @transform_5(%arg0: i32) -> (i32, i32, i32) {
    %c0_i32 = arith.constant 0 : i32
    %c0_i32_0 = arith.constant 0 : i32
    %c0_i32_1 = arith.constant 0 : i32
    return %arg0, %c0_i32, %c0_i32_0 : i32, i32, i32
  }
  func.func @transform_6(%arg0: i32) -> (i32, i32, i32) {
    %c0_i32 = arith.constant 0 : i32
    %c0_i32_0 = arith.constant 0 : i32
    %c0_i32_1 = arith.constant 0 : i32
    return %arg0, %c0_i32, %c0_i32_0 : i32, i32, i32
  }
}

module attributes {stable_mosaic.version = 11 : i64} {
  func.func @fc_kernel(%arg0: i32, %arg1: memref<2x4608xbf16, #tpu.memory_space<vmem>>, %arg2: memref<2x32xbf16, #tpu.memory_space<vmem>>, %arg3: memref<64x4608xbf16, #tpu.memory_space<vmem>>, %arg4: memref<64x32xbf16, #tpu.memory_space<vmem>>, %arg5: memref<1x64xf32, #tpu.memory_space<vmem>>, %arg6: memref<2x64xf32, #tpu.memory_space<vmem>>) attributes {dimension_semantics = [#tpu.dimension_semantics<parallel>], iteration_bounds = array<i64: 1>, scalar_prefetch = 0 : i64, scratch_operands = 0 : i64, tpu.core_type = #tpu.core_type<tc>, window_params = [{pipeline_mode = #tpu.pipeline_mode<synchronous>, transform_indices = @transform_0, window_bounds = array<i64: 2, 4608>}, {pipeline_mode = #tpu.pipeline_mode<synchronous>, transform_indices = @transform_1, window_bounds = array<i64: 2, 32>}, {transform_indices = @transform_2, window_bounds = array<i64: 64, 4608>}, {transform_indices = @transform_3, window_bounds = array<i64: 64, 32>}, {transform_indices = @transform_4, window_bounds = array<i64: 1, 64>}, {transform_indices = @transform_5, window_bounds = array<i64: 2, 64>}]} {
    %c0 = arith.constant 0 : index
    %c0_0 = arith.constant 0 : index
    %0 = vector.load %arg1[%c0, %c0_0] : memref<2x4608xbf16, #tpu.memory_space<vmem>>, vector<2x4608xbf16>
    %c0_1 = arith.constant 0 : index
    %c0_2 = arith.constant 0 : index
    %1 = vector.load %arg3[%c0_1, %c0_2] : memref<64x4608xbf16, #tpu.memory_space<vmem>>, vector<64x4608xbf16>
    %cst = arith.constant dense<0.000000e+00> : vector<2x64xf32>
    %2 = tpu.matmul %0, %1, %cst {dimension_numbers = #tpu.dot_dimension_numbers<[1], [1], [0], [0], [0, 0, 1, 0], [], []>} : vector<2x4608xbf16>, vector<64x4608xbf16>, vector<2x64xf32> -> vector<2x64xf32>
    %c0_3 = arith.constant 0 : index
    %c0_4 = arith.constant 0 : index
    %3 = vector.load %arg2[%c0_3, %c0_4] : memref<2x32xbf16, #tpu.memory_space<vmem>>, vector<2x32xbf16>
    %c0_5 = arith.constant 0 : index
    %c0_6 = arith.constant 0 : index
    %4 = vector.load %arg4[%c0_5, %c0_6] : memref<64x32xbf16, #tpu.memory_space<vmem>>, vector<64x32xbf16>
    %cst_7 = arith.constant dense<0.000000e+00> : vector<2x64xf32>
    %5 = tpu.matmul %3, %4, %cst_7 {dimension_numbers = #tpu.dot_dimension_numbers<[1], [1], [0], [0], [0, 0, 1, 0], [], []>} : vector<2x32xbf16>, vector<64x32xbf16>, vector<2x64xf32> -> vector<2x64xf32>
    %6 = arith.addf %2, %5 : vector<2x64xf32>
    %c0_8 = arith.constant 0 : index
    %c0_9 = arith.constant 0 : index
    %7 = vector.load %arg5[%c0_8, %c0_9] : memref<1x64xf32, #tpu.memory_space<vmem>>, vector<1x64xf32>
    %8 = vector.broadcast %7 : vector<1x64xf32> to vector<2x64xf32>
    %9 = arith.addf %6, %8 : vector<2x64xf32>
    %c0_10 = arith.constant 0 : index
    %c0_11 = arith.constant 0 : index
    %10 = vector.load %arg6[%c0_10, %c0_11] : memref<2x64xf32, #tpu.memory_space<vmem>>, vector<2x64xf32>
    tpu.vector_store %arg6[%c0_10, %c0_11], %9 {strides = array<i32>} : memref<2x64xf32, #tpu.memory_space<vmem>>, vector<2x64xf32>,
    return
  }
  func.func @transform_0(%arg0: i32) -> (i32, i32) {
    %c0_i32 = arith.constant 0 : i32
    %c0_i32_0 = arith.constant 0 : i32
    %c0_i32_1 = arith.constant 0 : i32
    return %c0_i32, %c0_i32_0 : i32, i32
  }
  func.func @transform_1(%arg0: i32) -> (i32, i32) {
    %c0_i32 = arith.constant 0 : i32
    %c0_i32_0 = arith.constant 0 : i32
    %c0_i32_1 = arith.constant 0 : i32
    return %c0_i32, %c0_i32_0 : i32, i32
  }
  func.func @transform_2(%arg0: i32) -> (i32, i32) {
    %c0_i32 = arith.constant 0 : i32
    %c0_i32_0 = arith.constant 0 : i32
    return %arg0, %c0_i32 : i32, i32
  }
  func.func @transform_3(%arg0: i32) -> (i32, i32) {
    %c0_i32 = arith.constant 0 : i32
    %c0_i32_0 = arith.constant 0 : i32
    return %arg0, %c0_i32 : i32, i32
  }
  func.func @transform_4(%arg0: i32) -> (i32, i32) {
    %c0_i32 = arith.constant 0 : i32
    %c0_i32_0 = arith.constant 0 : i32
    return %c0_i32, %arg0 : i32, i32
  }
  func.func @transform_5(%arg0: i32) -> (i32, i32) {
    %c0_i32 = arith.constant 0 : i32
    %c0_i32_0 = arith.constant 0 : i32
    return %c0_i32, %arg0 : i32, i32
  }
}

</mosaic_0001>

<bundles_post_ra>
// kernel: den_forward.2
= control target key start
LH: loop header
LB: loop body
LE: loop exit
PB: predicated region body
PF: predicated region fallthrough
CT: control target
= control target key end

     0   :  { %12 = vsyncpa [#allocation3], 0  ;;  %s1552_s21 = smov 0   ;;  %s1802_s0 = inlined_call_operand.vmem [shape: bf16[2,64,32], index: 0, kind: input, shape index: {}]   ;;  %s1803_s1 = inlined_call_operand.hbm [shape: bf16[32,384], index: 1, kind: input, shape index: {}]   ;;  %s1804_s2 = inlined_call_operand.vmem [shape: f32[1,128], index: 2, kind: input, shape index: {}]   ;;  %s1805_s3 = inlined_call_operand.vmem [shape: bf16[3,128,128], index: 3, kind: input, shape index: {}]   ;;  %s1806_s4 = inlined_call_operand.vmem [shape: f32[1,128], index: 4, kind: input, shape index: {}]   ;;  %s1807_s5 = inlined_call_operand.vmem [shape: bf16[2,36,128], index: 5, kind: output, shape index: {0}]   ;;  %s1808_s6 = inlined_call_operand.vmem [shape: bf16[2,1,32], index: 6, kind: output, shape index: {1}]  }
   0x1 LB: > { %s1558_s22 = sadd.s32 4294967295, %s1508_s21   ;;  %p1160_p0 = scmp.ge.s32.totalorder %s1508_s21, 1  ;;  %s1508_s21 = sphi %s1552_s21, %s18_s21  }
   0x2   : > { %p185_p1 = scmp.lt.s32.totalorder %s1508_s21, 3  ;;  %s1510_s23 = smov [#allocation2]  }
   0x3   : > { %s197_s24 = sshll.u32 %s1510_s23, 4  ;;  %p1809_p3 = scmp.eq.s32.totalorder %s1558_s22, 0  ;;  %s198_s24 = int_to_ptr.vmem [resolvable:$true] %s197_s24 }
   0x4   : > { %p1562_p2 = pnand %p1160_p0, %p185_p1  ;;  %s1470_s29 = scalar_lea.hbm %s1803_s1, 768 }
   0x5   : > { %p1471_p6 = scmp.ne.s32.totalorder %s1803_s1, %s1470_s29  ;;  %p1477_p10 = scmp.lt.u32.totalorder %s1470_s29, %s1803_s1 }
   0x6   : > { %s1811_s25 = scalar_select %p1562_p2, 1, 0 }
   0x7   : > { %p1413_p4 = pneg %p1562_p2 }
   0x9   : > { %p1571_p5 = pnand %p1809_p3, %p1413_p4 }
   0xb   : > { %p1472_p7 = pneg %p1571_p5 }
   0xd   : > { %p1473_p8 = pnand %p1472_p7, %p1471_p6 }
   0xf   : > { %p1474_p9 = pneg %p1473_p8 }
  0x11   : > { %p1479_p11 = pnand %p1477_p10, %p1474_p9 }
  0x13   : > { %1482 = shalt.err (!%p1479_p11)
}
  0x14   : > { %s1483_s10 = scalar_lea.vmem %s198_s24, 768  ;;  %p1491_p1 = scmp.lt.s32.totalorder %s198_s24, %s198_s24 }
  0x15   : > { %p1484_p12 = scmp.ne.s32.totalorder %s198_s24, %s1483_s10  ;;  %p1492_p4 = scmp.lt.s32.totalorder %s1483_s10, %s1483_s10 }
  0x17   : > { %p1486_p13 = pnand %p1484_p12, %p1472_p7  ;;  %p1493_p3 = por %p1492_p4, %p1491_p1 }
  0x19   : > { %p1487_p0 = pneg %p1486_p13 }
  0x1b   : > { %p1494_p2 = pnand %p1493_p3, %p1487_p0 }
  0x1d   : > { %1497 = shalt.err (!%p1494_p2)
}
  0x1e   : > { %s1511_s11 = smov 192   ;;  %s1512_s12 = smov 12  }
  0x1f   : > { %1416 = dma.hbm_to_vmem [thread:$0]  (!%p1571_p5), %s1803_s1, 768, %s198_s24, [#allocation3], %s1511_s11, %s1511_s11, %s1512_s12  }
  0x20   : > { %p1813_p6 = scmp.ne.s32.totalorder %s1811_s25, 0 }
  0x21   : > { %p1814_p8 = scmp.eq.s32.totalorder (!%p1813_p6), %s1558_s22, 0 }
  0x22   : > { %230 = sbr.rel (%p1813_p6) target bundleno = 559 (0x22f), region = 40 }
  0x29   : > { %1503 = dma.done.wait (%p1814_p8), [#allocation3], 768   ;;  %p1815_p7 = pmov %p1814_p8 }
  0x2a   : > { %p263_p2 = scmp.lt.s32.totalorder %s1558_s22, 1  ;;  %v1513_v0 = vmov 0   ;;  %v1434_v1 = vld [vmem:[#allocation2 + $0x4] ss:$12 sps:$4 sm:$0xff]   ;;  %v1436_v2 = vld [vmem:[#allocation2] ss:$12 sps:$4 sm:$0xff]  }
  0x2b   : > { %1505 = vsyncadd (%p1815_p7), [#allocation3], 4294966528  ;;  %393 = vmatprep.mubr.bf16.mxu0 %v1513_v0  ;;  %vm348_vm0 = vcmask 261120   ;;  %361 = vmatprep.subr.bf16.mxu0 %v1434_v1  ;;  %v1437_v3 = vld [vmem:[#allocation2 + $0x1c] ss:$12 sps:$4 sm:$0xff]   ;;  %v1514_v10 = vmov 0.0  }
  0x2c   : > { %s1817_s22 = smov (!%p263_p2, %s1558_s22), 1  ;;  %362 = vmatpush1.bf16.msra.mxu0 %v1436_v2  ;;  %v1439_v4 = vld [vmem:[#allocation2 + $0x8] ss:$12 sps:$4 sm:$0xff]   ;;  %v1440_v5 = vld [vmem:[#allocation2 + $0x18] ss:$12 sps:$4 sm:$0xff]   ;;  %vm1515_vm1 = vmmov 0  }
  0x2d   : > { %s1251_s15 = sshll.u32 %s1817_s22, 5  ;;  %363 = vmatprep.subr.bf16.mxu0 %v1437_v3  ;;  %1300 = vmatprep.subr.bf16.mxu1 %v1439_v4  ;;  %v1442_v7 = vld [vmem:[#allocation2 + $0x20] ss:$12 sps:$4 sm:$0xff]   ;;  %v1450_v15 = vld [vmem:[%s1805_s3 + $0x10] sm:$0xff]   ;;  %v1452_v18 = vld [vmem:[%s1805_s3 + $0x18] sm:$0xff]   ;;  %vm1014_vm2 = vcmask 523264   ;;  %s275_s29 = scalar_lea.vmem %s1808_s6, %s1817_s22 }
  0x2e   : > { %s1605_s18 = scalar_lea.vmem %s1802_s0, %s1251_s15  ;;  %1301 = vmatpush3.bf16.msra.mxu1 %v1439_v4  ;;  %v1446_v11 = vld [vmem:[%s1805_s3] sm:$0xff]   ;;  %v1448_v13 = vld [vmem:[%s1805_s3 + $0x8] sm:$0xff]   ;;  %v1451_v17 = vld [vmem:[%s1805_s3 + $0x50] sm:$0xff]   ;;  %vm897_vm3 = vcmask 1046528   ;;  %vm1060_vm4 = vcmask 253952   ;;  %vm927_vm7 = vcmask 1045504  }
  0x2f   : > { %v1608_v6 = vld [vmem:[%s1605_s18] sm:$0xff]   ;;  %1302 = vmatprep.subr.bf16.mxu1 %v1442_v7  ;;  %v1613_v8 = vld [vmem:[%s1605_s18 + $0x8] sm:$0xff]   ;;  %v1616_v9 = vld [vmem:[%s1605_s18 + $0x10] sm:$0xff]   ;;  %vm1061_vm5 = vsmask.f32 256  ;;  %s1408_s8 = smul.u32 20, %s1817_s22 }
  0x30   : > { %1304 = vmatprep.mubr.msk.bf16.mxu1 %vm348_vm0, %v1608_v6  ;;  %364 = vmatpush1.bf16.msra.mxu0 %v1440_v5  ;;  %v1447_v12 = vld [vmem:[%s1805_s3 + $0x40] sm:$0xff]   ;;  %v1449_v14 = vld [vmem:[%s1805_s3 + $0x48] sm:$0xff]   ;;  %v1643_v16 = vld [vmem:[%s1605_s18 + $0x18] sm:$0xff]  }
  0x31   : > { %1312 = vmatprep.subr.bf16.mxu0 %v1514_v10  ;;  %v1453_v19 = vld [vmem:[%s1805_s3 + $0x58] sm:$0xff]   ;;  %v1454_v20 = vld [vmem:[%s1805_s3 + $0x20] sm:$0xff]   ;;  %v1456_v22 = vld [vmem:[%s1805_s3 + $0x28] sm:$0xff]   ;;  %s1784_s11 = scalar_lea.vmem %s1807_s5, %s1408_s8 }
  0x32   : > { %1303 = vmatpush3.bf16.msra.mxu1 %v1442_v7  ;;  %v1455_v21 = vld [vmem:[%s1805_s3 + $0x60] sm:$0xff]   ;;  %v1457_v23 = vld [vmem:[%s1805_s3 + $0x68] sm:$0xff]   ;;  %v1458_v24 = vld [vmem:[%s1805_s3 + $0x30] sm:$0xff]  }
  0x33   : > { %1178 = vmatmul.mubr.msk.bf16.vlgmr.msra.gmra.mrb[0].mxu0 %vm348_vm0, %v1608_v6  ;;  %1340 = vmatprep.subr.bf16.mxu1 %v1514_v10  ;;  %v1459_v25 = vld [vmem:[%s1805_s3 + $0x70] sm:$0xff]   ;;  %v1460_v26 = vld [vmem:[%s1805_s3 + $0x38] sm:$0xff]   ;;  %v1186_v39 = vld [vmem:[%s1804_s2] ss:$0 sm:$0xff] }
  0x34   : > { %402 = vmatprep.mubr.bf16.mxu0 %v1513_v0  ;;  %1313 = vmatpush3.bf16.msra.mxu0 %v1446_v11  ;;  %v1461_v27 = vld [vmem:[%s1805_s3 + $0x78] sm:$0xff]   ;;  %v1462_v57 = vld [vmem:[%s1805_s3 + $0x80] sm:$0xff]   ;;  %v1463_v1 = vld [vmem:[%s1805_s3 + $0x88] sm:$0xff]  }
  0x35   : > { %1314 = vmatprep.subr.bf16.mxu0 %v1514_v10  ;;  %1305 = vmatmul.mubr.msk.bf16.vlgmr.msra.gmra.mrb[0].mxu1 %vm348_vm0, %v1613_v8  ;;  %vm1062_vm6 = vmand %vm1060_vm4, %vm1061_vm5 }
  0x36   : > { %1308 = vmatprep.mubr.msk.bf16.mxu1 %vm348_vm0, %v1616_v9  ;;  %1341 = vmatpush3.bf16.msra.mxu1 %v1447_v12  ;;  %v1464_v12 = vld [vmem:[%s1805_s3 + $0x90] sm:$0xff]  }
  0x37   : > { %1342 = vmatprep.subr.bf16.mxu1 %v1514_v10 }
  0x38   : > { %1315 = vmatpush3.bf16.msra.mxu0 %v1448_v13 }
  0x39   : > { %1316 = vmatprep.subr.bf16.mxu0 %v1514_v10 }
  0x3a   : > { %1343 = vmatpush3.bf16.msra.mxu1 %v1449_v14 }
  0x3b   : > { %1179 = vmatmul.mubr.msk.bf16.gmra.mrb[4].mxu0 %vm348_vm0, %v1613_v8  ;;  %1344 = vmatprep.subr.bf16.mxu1 %v1514_v10 }
  0x3c   : > { %412 = vmatprep.mubr.bf16.mxu0 %v1513_v0  ;;  %1317 = vmatpush3.bf16.msra.mxu0 %v1450_v15 }
  0x3d   : > { %1318 = vmatprep.subr.bf16.mxu0 %v1514_v10  ;;  %1309 = vmatmul.mubr.msk.bf16.gmra.mrb[4].mxu1 %vm348_vm0, %v1643_v16 }
  0x3e   : > { %1345 = vmatpush3.bf16.msra.mxu1 %v1451_v17  ;;  %1356 = vmatprep.mubr.msk.bf16.mxu1 %vm1515_vm1, %v1514_v10 }
  0x3f   : > { %1346 = vmatprep.subr.bf16.mxu1 %v1514_v10 }
  0x40   : > { %1319 = vmatpush3.bf16.msra.mxu0 %v1452_v18 }
  0x41   : > { %1320 = vmatprep.subr.bf16.mxu0 %v1514_v10 }
  0x42   : > { %1347 = vmatpush3.bf16.msra.mxu1 %v1453_v19  ;;  %v1465_v19 = vld [vmem:[%s1805_s3 + $0x98] sm:$0xff]  }
  0x43   : > { %1180 = vmatmul.mubr.msk.bf16.gmra.mrb[8].mxu0 %vm348_vm0, %v1616_v9  ;;  %1348 = vmatprep.subr.bf16.mxu1 %v1514_v10 }
  0x44   : > { %422 = vmatprep.mubr.bf16.mxu0 %v1513_v0  ;;  %1321 = vmatpush3.bf16.msra.mxu0 %v1454_v20 }
  0x45   : > { %1322 = vmatprep.subr.bf16.mxu0 %v1514_v10 }
  0x46   : > { %1349 = vmatpush3.bf16.msra.mxu1 %v1455_v21 }
  0x47   : > { %1350 = vmatprep.subr.bf16.mxu1 %v1514_v10 }
  0x48   : > { %1323 = vmatpush3.bf16.msra.mxu0 %v1456_v22  ;;  %v1466_v22 = vld [vmem:[%s1805_s3 + $0xa0] sm:$0xff]  }
  0x49   : > { %1324 = vmatprep.subr.bf16.mxu0 %v1514_v10 }
  0x4a   : > { %1351 = vmatpush3.bf16.msra.mxu1 %v1457_v23 }
  0x4b   : > { %1181 = vmatmul.mubr.msk.bf16.gmra.mrb[12].mxu0 %vm348_vm0, %v1643_v16  ;;  %1352 = vmatprep.subr.bf16.mxu1 %v1514_v10 }
  0x4c   : > { %1325 = vmatpush3.bf16.msra.mxu0 %v1458_v24  ;;  %1328 = vmatprep.mubr.msk.bf16.mxu0 %vm1515_vm1, %v1514_v10  ;;  %v1467_v24 = vld [vmem:[%s1805_s3 + $0xa8] sm:$0xff]  }
  0x4d   : > { %1326 = vmatprep.subr.bf16.mxu0 %v1514_v10 }
  0x4e   : > { %1353 = vmatpush3.bf16.msra.mxu1 %v1459_v25  ;;  %v1516_v25 = vmov 1065369472  }
  0x4f   : > { %1354 = vmatprep.subr.bf16.mxu1 %v1514_v10 }
  0x50   : > { %1327 = vmatpush3.bf16.msra.mxu0 %v1460_v26  ;;  %v1469_v26 = vld [vmem:[%s1805_s3 + $0xb8] sm:$0xff]  }
  0x51   : > { %1368 = vmatprep.subr.bf16.mxu0 %v1514_v10 }
  0x52   : > { %1355 = vmatpush3.bf16.msra.mxu1 %v1461_v27 }
  0x53   : > { %1396 = vmatprep.subr.bf16.mxu1 %v1514_v10 }
 0x106   : > { %v395_v28 = vpop.f32.mrb[0].mxu0 }
 0x107   : > { %v397_v29 = vpop.f32.mrb[1].mxu0 }
 0x108   : > { %v398_v30 = vpop.f32.mrb[2].mxu0  ;;  %v1306_v32 = vpop.f32.mrb[0].mxu1 }
 0x109   : > { %v400_v31 = vpop.f32.mrb[3].mxu0  ;;  %v464_v34 = vpop.f32.mrb[1].mxu1 }
 0x10a   : > { %v493_v33 = vadd.f32 %v400_v31, %v395_v28  ;;  %v1307_v35 = vpop.f32.mrb[2].mxu1 }
 0x10b   : > { %v466_v37 = vpop.f32.mrb[3].mxu1 }
 0x10c   : > { %v499_v36 = vadd.f32 %v1306_v32, %v493_v33 }
 0x10e   : > { %v404_v38 = vpop.f32.mrb[4].mxu0  ;;  %v511_v45 = vadd.f32 %v1186_v39, %v499_v36 }
 0x10f   : > { %v406_v40 = vpop.f32.mrb[5].mxu0 }
 0x110   : > { %v494_v41 = vadd.f32 %v406_v40, %v398_v30  ;;  %v408_v42 = vpop.f32.mrb[6].mxu0  ;;  %v1310_v44 = vpop.f32.mrb[4].mxu1  ;;  %v517_v53 = vmax.f32 %v511_v45, 0.0 }
 0x111   : > { %v410_v43 = vpop.f32.mrb[7].mxu0  ;;  %v478_v48 = vpop.f32.mrb[5].mxu1 }
 0x112   : > { %v500_v46 = vadd.f32 %v1307_v35, %v494_v41  ;;  %v495_v47 = vadd.f32 %v410_v43, %v404_v38  ;;  %v1311_v49 = vpop.f32.mrb[6].mxu1 }
 0x113   : > { %v481_v52 = vpop.f32.mrb[7].mxu1 }
 0x114   : > { %v512_v50 = vadd.f32 %v1186_v39, %v500_v46  ;;  %v501_v51 = vadd.f32 %v495_v47, %v478_v48 }
 0x116   : > { %v518_v54 = vmax.f32 %v512_v50, 0.0  ;;  %v414_v55 = vpop.f32.mrb[8].mxu0  ;;  %v513_v62 = vadd.f32 %v1186_v39, %v501_v51 }
 0x117   : > { %v416_v56 = vpop.f32.mrb[9].mxu0 }
 0x118   : > { %v1711_v58 = vpack.c.bf16 %v518_v54, %v517_v53  ;;  %v496_v59 = vadd.f32 %v416_v56, %v408_v42  ;;  %v418_v60 = vpop.f32.mrb[10].mxu0  ;;  %v519_v4 = vmax.f32 %v513_v62, 0.0 }
 0x119   : > { %v420_v61 = vpop.f32.mrb[11].mxu0 }
 0x11a   : > { %v502_v63 = vadd.f32 %v496_v59, %v481_v52  ;;  %1329 = vmatmul.mubr.bf16.vlgmr.msra.gmra.mrb[16].mxu0 %v1711_v58  ;;  %1357 = vmatmul.mubr.bf16.vlgmr.msra.gmra.mrb[8].mxu1 %v1711_v58  ;;  %v497_v0 = vadd.f32 %v420_v61, %v414_v55 }
 0x11b   : > { %1369 = vmatpush3.bf16.msra.mxu0 %v1462_v57  ;;  %1332 = vmatprep.mubr.msk.bf16.mxu0 %vm1515_vm1, %v1514_v10 }
 0x11c   : > { %v514_v2 = vadd.f32 %v1186_v39, %v502_v63  ;;  %v503_v3 = vadd.f32 %v1310_v44, %v497_v0  ;;  %1370 = vmatprep.subr.bf16.mxu0 %v1514_v10  ;;  %1360 = vmatprep.mubr.msk.bf16.mxu1 %vm1515_vm1, %v1514_v10 }
 0x11d   : > { %1397 = vmatpush3.bf16.msra.mxu1 %v1608_v6 }
 0x11e   : > { %v520_v5 = vmax.f32 %v514_v2, 0.0  ;;  %v424_v7 = vpop.f32.mrb[12].mxu0  ;;  %1398 = vmatprep.subr.bf16.mxu1 %v1514_v10  ;;  %v515_v6 = vadd.f32 %v1186_v39, %v503_v3 }
 0x11f   : > { %1371 = vmatpush3.bf16.msra.mxu0 %v1463_v1  ;;  %v425_v11 = vpop.f32.mrb[13].mxu0 }
 0x120   : > { %v498_v13 = vadd.f32 %v425_v11, %v418_v60  ;;  %1372 = vmatprep.subr.bf16.mxu0 %v1514_v10  ;;  %v524_v14 = vpack.c.bf16 %v520_v5, %v519_v4  ;;  %v427_v15 = vpop.f32.mrb[14].mxu0  ;;  %v1063_v5 = vld [vmem:[%s275_s29] sm:$0x1] }
 0x121   : > { %v428_v17 = vpop.f32.mrb[15].mxu0  ;;  %1399 = vmatpush3.bf16.msra.mxu1 %v1613_v8  ;;  %v521_v8 = vmax.f32 %v515_v6, 0.0 }
 0x122   : > { %v504_v18 = vadd.f32 %v1311_v49, %v498_v13  ;;  %1333 = vmatmul.mubr.bf16.gmra.mrb[20].mxu0 %v524_v14  ;;  %1361 = vmatmul.mubr.bf16.gmra.mrb[12].mxu1 %v524_v14 }
 0x123   : > { %1373 = vmatpush3.bf16.msra.mxu0 %v1464_v12  ;;  %1336 = vmatprep.mubr.msk.bf16.mxu0 %vm1515_vm1, %v1514_v10 }
 0x124   : > { %v516_v20 = vadd.f32 %v1186_v39, %v504_v18  ;;  %1374 = vmatprep.subr.bf16.mxu0 %v1514_v10  ;;  %1364 = vmatprep.mubr.msk.bf16.mxu1 %vm1515_vm1, %v1514_v10 }
 0x125   : > { %1400 = vmatprep.subr.bf16.mxu1 %v1514_v10 }
 0x126   : > { %v522_v21 = vmax.f32 %v516_v20, 0.0  ;;  %1401 = vmatpush3.bf16.msra.mxu1 %v1616_v9  ;;  %v1468_v9 = vld [vmem:[%s1805_s3 + $0xb0] sm:$0xff]   ;;  %v1243_v20 = vld [vmem:[%s1806_s4] ss:$0 sm:$0xff] }
 0x127   : > { %1375 = vmatpush3.bf16.msra.mxu0 %v1465_v19  ;;  %1402 = vmatprep.subr.bf16.mxu1 %v1514_v10 }
 0x128   : > { %1376 = vmatprep.subr.bf16.mxu0 %v1514_v10  ;;  %v525_v23 = vpack.c.bf16 %v522_v21, %v521_v8 }
 0x12a   : > { %1337 = vmatmul.mubr.bf16.gmra.mrb[24].mxu0 %v525_v23  ;;  %1365 = vmatmul.mubr.bf16.gmra.mrb[16].mxu1 %v525_v23 }
 0x12b   : > { %1377 = vmatpush3.bf16.msra.mxu0 %v1466_v22  ;;  %1384 = vmatprep.mubr.msk.bf16.mxu0 %vm1515_vm1, %v1514_v10 }
 0x12c   : > { %1378 = vmatprep.subr.bf16.mxu0 %v1514_v10  ;;  %1403 = vmatpush3.bf16.msra.mxu1 %v1643_v16 }
 0x12d   : > { %1404 = vmatprep.mubr.msk.bf16.mxu1 %vm1515_vm1, %v1514_v10 }
 0x12f   : > { %1379 = vmatpush3.bf16.msra.mxu0 %v1467_v24 }
 0x130   : > { %1380 = vmatprep.subr.bf16.mxu0 %v1514_v10 }
 0x132   : > { %1405 = vmatmul.mubr.msk.bf16.vlgmr.msra.gmra.mrb[20].mxu1 %vm1014_vm2, %v1516_v25 }
 0x133   : > { %1381 = vmatpush3.bf16.msra.mxu0 %v1468_v9 }
 0x134   : > { %1382 = vmatprep.subr.bf16.mxu0 %v1514_v10 }
 0x137   : > { %1383 = vmatpush3.bf16.msra.mxu0 %v1469_v26 }
 0x13a   : > { %1385 = vmatmul.mubr.bf16.vlgmr.msra.gmra.mrb[28].mxu0 %v1711_v58 }
 0x13b   : > { %1388 = vmatprep.mubr.msk.bf16.mxu0 %vm1515_vm1, %v1514_v10 }
 0x142   : > { %1389 = vmatmul.mubr.bf16.gmra.mrb[32].mxu0 %v524_v14 }
 0x143   : > { %1392 = vmatprep.mubr.msk.bf16.mxu0 %vm1515_vm1, %v1514_v10 }
 0x14a   : > { %1393 = vmatmul.mubr.bf16.gmra.mrb[36].mxu0 %v525_v23 }
 0x1ed   : > { %v624_v16 = vpop.f32.mrb[16].mxu0  ;;  %v746_v27 = vpop.f32.mrb[8].mxu1 }
 0x1ee   : > { %v1330_v28 = vpop.f32.mrb[17].mxu0  ;;  %v1358_v29 = vpop.f32.mrb[9].mxu1  ;;  %v898_v32 = vrot.slane %v746_v27, 1 }
 0x1ef   : > { %v627_v30 = vpop.f32.mrb[18].mxu0  ;;  %v749_v31 = vpop.f32.mrb[10].mxu1 }
 0x1f0   : > { %v899_v33 = vrot.slane %v749_v31, 1  ;;  %v1331_v34 = vpop.f32.mrb[19].mxu0  ;;  %v1359_v35 = vpop.f32.mrb[11].mxu1 }
 0x1f2   : > { %v900_v36 = vsel %vm897_vm3, %v898_v32, %v899_v33 }
 0x1f3   : > { %v915_v37 = vadd.f32 %v900_v36, %v624_v16 }
 0x1f5   : > { %v632_v38 = vpop.f32.mrb[20].mxu0  ;;  %v754_v39 = vpop.f32.mrb[12].mxu1 }
 0x1f6   : > { %v901_v40 = vrot.slane %v754_v39, 1  ;;  %v1334_v41 = vpop.f32.mrb[21].mxu0  ;;  %v1362_v10 = vpop.f32.mrb[13].mxu1 }
 0x1f7   : > { %v635_v42 = vpop.f32.mrb[22].mxu0  ;;  %v757_v43 = vpop.f32.mrb[14].mxu1 }
 0x1f8   : > { %v902_v44 = vsel %vm897_vm3, %v899_v33, %v901_v40  ;;  %v903_v45 = vrot.slane %v757_v43, 1  ;;  %v1335_v46 = vpop.f32.mrb[23].mxu0  ;;  %v1363_v47 = vpop.f32.mrb[15].mxu1 }
 0x1f9   : > { %v916_v48 = vadd.f32 %v902_v44, %v627_v30 }
 0x1fa   : > { %v904_v49 = vsel %vm897_vm3, %v901_v40, %v903_v45 }
 0x1fb   : > { %v917_v50 = vadd.f32 %v904_v49, %v632_v38 }
 0x1fd   : > { %v640_v51 = vpop.f32.mrb[24].mxu0  ;;  %v762_v52 = vpop.f32.mrb[16].mxu1 }
 0x1fe   : > { %v905_v53 = vrot.slane %v762_v52, 1  ;;  %v1338_v54 = vpop.f32.mrb[25].mxu0  ;;  %v1366_v55 = vpop.f32.mrb[17].mxu1 }
 0x1ff   : > { %v643_v56 = vpop.f32.mrb[26].mxu0  ;;  %v765_v57 = vpop.f32.mrb[18].mxu1 }
 0x200   : > { %v906_v58 = vsel %vm897_vm3, %v903_v45, %v905_v53  ;;  %v907_v59 = vrot.slane %v765_v57, 1  ;;  %v1339_v60 = vpop.f32.mrb[27].mxu0  ;;  %v1367_v61 = vpop.f32.mrb[19].mxu1 }
 0x201   : > { %v918_v62 = vadd.f32 %v906_v58, %v635_v42 }
 0x202   : > { %v908_v63 = vsel %vm897_vm3, %v905_v53, %v907_v59  ;;  %v920_v0 = vadd.f32 %v907_v59, %v643_v56 }
 0x203   : > { %v919_v1 = vadd.f32 %v908_v63, %v640_v51 }
 0x205   : > { %v1052_v2 = vpop.f32.mrb[20].mxu1 }
 0x206   : > { %v1058_v3 = vmul.f32 0.015625, %v1052_v2  ;;  %v1406_v4 = vpop.f32.mrb[21].mxu1 }
 0x207   : > { %v1055_v7 = vpop.f32.mrb[22].mxu1 }
 0x208   : > { %v1059_v11 = vpack.c.bf16 %v1058_v3, %v1058_v3  ;;  %v1407_v12 = vpop.f32.mrb[23].mxu1 }
 0x20a   : > { %v1064_v13 = vsel %vm1062_vm6, %v1059_v11, %v1063_v5 }
 0x20b   : > { %1065 = vst [vmem:[%s275_s29] sm:$0x1] %v1064_v13 }
 0x20d   : > { %v868_v14 = vpop.f32.mrb[28].mxu0 }
 0x20e   : > { %v1386_v15 = vpop.f32.mrb[29].mxu0  ;;  %v928_v6 = vrot.slane %v868_v14, 2 }
 0x20f   : > { %v871_v17 = vpop.f32.mrb[30].mxu0 }
 0x210   : > { %v929_v18 = vrot.slane %v871_v17, 2  ;;  %v1387_v19 = vpop.f32.mrb[31].mxu0 }
 0x212   : > { %v930_v8 = vsel %vm927_vm7, %v928_v6, %v929_v18 }
 0x213   : > { %v945_v21 = vadd.f32 %v930_v8, %v915_v37 }
 0x215   : > { %v957_v22 = vadd.f32 %v1243_v20, %v945_v21  ;;  %v876_v23 = vpop.f32.mrb[32].mxu0 }
 0x216   : > { %v931_v24 = vrot.slane %v876_v23, 2  ;;  %v1390_v9 = vpop.f32.mrb[33].mxu0 }
 0x217   : > { %v963_v25 = vmax.f32 %v957_v22, 0.0  ;;  %v879_v26 = vpop.f32.mrb[34].mxu0 }
 0x218   : > { %v932_v16 = vsel %vm927_vm7, %v929_v18, %v931_v24  ;;  %v933_v27 = vrot.slane %v879_v26, 2  ;;  %v1391_v28 = vpop.f32.mrb[35].mxu0 }
 0x219   : > { %v969_v29 = vpack.c.bf16 %v963_v25, %v963_v25  ;;  %v946_v30 = vadd.f32 %v932_v16, %v916_v48 }
 0x21a   : > { %v934_v31 = vsel %vm927_vm7, %v931_v24, %v933_v27 }
 0x21b   : > { %970 = vst [vmem:[%s1784_s11] sm:$0x7] %v969_v29  ;;  %v958_v32 = vadd.f32 %v1243_v20, %v946_v30  ;;  %v947_v33 = vadd.f32 %v934_v31, %v917_v50 }
 0x21d   : > { %v964_v34 = vmax.f32 %v958_v32, 0.0  ;;  %v959_v35 = vadd.f32 %v1243_v20, %v947_v33  ;;  %v884_v36 = vpop.f32.mrb[36].mxu0 }
 0x21e   : > { %v935_v37 = vrot.slane %v884_v36, 2  ;;  %v1394_v38 = vpop.f32.mrb[37].mxu0 }
 0x21f   : > { %v1252_v39 = vpack.c.bf16 %v964_v34, %v964_v34  ;;  %v965_v40 = vmax.f32 %v959_v35, 0.0  ;;  %v887_v41 = vpop.f32.mrb[38].mxu0 }
 0x220   : > { %v936_v10 = vsel %vm927_vm7, %v933_v27, %v935_v37  ;;  %v937_v42 = vrot.slane %v887_v41, 2  ;;  %v1395_v43 = vpop.f32.mrb[39].mxu0 }
 0x221   : > { %v975_v44 = vrot.slane %v1252_v39, 5  ;;  %v1253_v45 = vpack.c.bf16 %v965_v40, %v965_v40  ;;  %v948_v46 = vadd.f32 %v936_v10, %v918_v62 }
 0x222   : > { %v938_v47 = vsel %vm927_vm7, %v935_v37, %v937_v42  ;;  %v950_v48 = vadd.f32 %v937_v42, %v920_v0 }
 0x223   : > { %v976_v49 = vrot.slane %v975_v44, 4  ;;  %979 = vst [vmem:[%s1784_s11] sm:$0x8] %v975_v44  ;;  %v985_v50 = vrot.slane %v1253_v45, 6  ;;  %v960_v51 = vadd.f32 %v1243_v20, %v948_v46  ;;  %v949_v52 = vadd.f32 %v938_v47, %v919_v1 }
 0x224   : > { %v962_v53 = vadd.f32 %v1243_v20, %v950_v48 }
 0x225   : > { %980 = vst [vmem:[%s1784_s11 + $0x4] sm:$0x3] %v976_v49  ;;  %v986_v54 = vrot.slane %v985_v50, 4  ;;  %989 = vst [vmem:[%s1784_s11 + $0x4] sm:$0xc] %v985_v50  ;;  %v966_v55 = vmax.f32 %v960_v51, 0.0  ;;  %v961_v56 = vadd.f32 %v1243_v20, %v949_v52 }
 0x226   : > { %v968_v57 = vmax.f32 %v962_v53, 0.0 }
 0x227   : > { %990 = vst [vmem:[%s1784_s11 + $0x8] sm:$0x1] %v986_v54  ;;  %v1254_v58 = vpack.c.bf16 %v966_v55, %v966_v55  ;;  %v967_v59 = vmax.f32 %v961_v56, 0.0 }
 0x228   : > { %v1255_v60 = vpack.c.bf16 %v968_v57, %v968_v57 }
 0x229   : > { %v995_v61 = vrot.slane %v1254_v58, 7  ;;  %v998_v62 = vpack.c.bf16 %v967_v59, %v967_v59 }
 0x22a   : > { %v1004_v63 = vrot.slane %v1255_v60, 5 }
 0x22b   : > { %997 = vst [vmem:[%s1784_s11 + $0x8] sm:$0xe] %v995_v61  ;;  %999 = vst [vmem:[%s1784_s11 + $0xc] sm:$0x7] %v998_v62 }
 0x22c   : > { %v1005_v0 = vrot.slane %v1004_v63, 4  ;;  %1008 = vst [vmem:[%s1784_s11 + $0xc] sm:$0x8] %v1004_v63 }
 0x22e   : > { %1009 = vst [vmem:[%s1784_s11 + $0x10] sm:$0x3] %v1005_v0 }
 0x22f PF: > { %s18_s21 = sadd.s32 1, %s1508_s21  }
 0x230   : > { %p15_p3 = scmp.ge.s32.totalorder %s18_s21, 4  }
 0x232   :  { %17 = sbr.rel (!%p15_p3) target bundleno = 1 (0x1), region = 89 }
 0x239   :  { %1099 = vsyncpa [#allocation3], 1 }
 0x23a   :  { %1101 = vsyncpa [#allocation3 + $0x1], 1 }

// kernel: den_forward.3
= control target key start
LH: loop header
LB: loop body
LE: loop exit
PB: predicated region body
PF: predicated region fallthrough
CT: control target
= control target key end

     0   :  { %10 = vsyncpa [#allocation3], 0  ;;  %s2570_s0 = inlined_call_operand.vmem [shape: bf16[2,4608], index: 0, kind: input, shape index: {}]   ;;  %s2571_s1 = inlined_call_operand.vmem [shape: bf16[2,32], index: 1, kind: input, shape index: {}]   ;;  %s2572_s2 = inlined_call_operand.hbm [shape: bf16[64,4608], index: 2, kind: input, shape index: {}]   ;;  %s2573_s3 = inlined_call_operand.vmem [shape: bf16[64,32], index: 3, kind: input, shape index: {}]   ;;  %s2574_s4 = inlined_call_operand.vmem [shape: f32[1,64], index: 4, kind: input, shape index: {}]   ;;  %s2575_s5 = inlined_call_operand.hbm [shape: f32[2,64], index: 5, kind: output, shape index: {}]  }
   0x1   :  { %11 = vsyncpa [#allocation4], 0  ;;  %s2443_s18 = smov [#allocation2]   ;;  %s2395_s22 = scalar_lea.hbm %s2572_s2, 18432 }
   0x2   :  { %s21_s19 = sshll.u32 %s2443_s18, 4  ;;  %p2396_p0 = scmp.ne.s32.totalorder %s2572_s2, %s2395_s22  ;;  %s22_s19 = int_to_ptr.vmem [resolvable:$true] %s21_s19 }
   0x3   :  { %p2399_p1 = scmp.lt.u32.totalorder %s2395_s22, %s2572_s2 }
   0x5   :  { %p2401_p2 = pnand %p2399_p1, %p2396_p0 }
   0x7   :  { %2404 = shalt.err (!%p2401_p2)
}
   0x8   :  { %s2405_s27 = scalar_lea.vmem %s22_s19, 18432  ;;  %p2410_p4 = scmp.lt.s32.totalorder %s22_s19, %s22_s19 }
   0x9   :  { %p2406_p3 = scmp.ne.s32.totalorder %s22_s19, %s2405_s27  ;;  %p2411_p5 = scmp.lt.s32.totalorder %s2405_s27, %s2405_s27 }
   0xb   :  { %p2412_p6 = por %p2411_p5, %p2410_p4 }
   0xd   :  { %p2413_p7 = pnand %p2412_p6, %p2406_p3 }
   0xf   :  { %2416 = shalt.err (!%p2413_p7)
}
  0x10   :  { %s2444_s28 = smov 2304   ;;  %s2445_s29 = smov 144  }
  0x11   :  { %27 = dma.hbm_to_vmem [thread:$0]  %s2572_s2, 18432, %s22_s19, [#allocation3], %s2444_s28, %s2444_s28, %s2445_s29  }
  0x12   :  { %2439 = dma.done.wait [#allocation3], 18432  }
  0x13   :  { %2440 = vsyncadd [#allocation3], 4294948864  ;;  %v2446_v0 = vmov 0.0   ;;  %vm2447_vm0 = vmmov 0   ;;  %v2448_v1 = vmov 1966171168   ;;  %v279_v3 = vlaneseq }
  0x14   :  { %2152 = vmatprep.subr.bf16.mxu0 %v2446_v0  ;;  %2160 = vmatprep.mubr.msk.bf16.mxu0 %vm2447_vm0, %v2446_v0  ;;  %v277_v2 = vunpack.c.l.s4 %v2448_v1  ;;  %vm214_vm1 = vcmask 261120   ;;  %v2171_v4 = vld [vmem:[%s2573_s3] sm:$0xff]   ;;  %v2175_v10 = vld [vmem:[%s2573_s3 + $0x8] sm:$0xff]   ;;  %v2179_v18 = vld [vmem:[%s2573_s3 + $0x10] sm:$0xff]   ;;  %s2449_s25 = smov [#allocation5]   ;;  %vm1979_vm2 = vcmask 517120  }
  0x15   :  { %v2172_v5 = vld [vmem:[#allocation2 + $0x4] ss:$144 sps:$4 sm:$0xff]   ;;  %v219_v6 = vsel %vm214_vm1, %v2171_v4, 0  ;;  %v2174_v7 = vld [vmem:[#allocation2] ss:$144 sps:$4 sm:$0xff]   ;;  %v280_v9 = vshrl.u32 %v279_v3, 7 }
  0x16   :  { %v278_v8 = vunpack.c.0.s8 %v277_v2  ;;  %2153 = vmatpush3.bf16.xpose.msra.mxu0 %v219_v6  ;;  %1251 = vmatprep.subr.bf16.mxu1 %v2172_v5  ;;  %v2176_v11 = vld [vmem:[#allocation2 + $0x124] ss:$144 sps:$4 sm:$0xff]   ;;  %v222_v13 = vsel %vm214_vm1, %v2175_v10, 0  ;;  %v2178_v14 = vld [vmem:[#allocation2 + $0x120] ss:$144 sps:$4 sm:$0xff]   ;;  %v225_v21 = vsel %vm214_vm1, %v2179_v18, 0 }
  0x17   :  { %1252 = vmatpush1.bf16.xpose.msra.mxu1 %v2174_v7  ;;  %2154 = vmatprep.subr.bf16.mxu0 %v2446_v0  ;;  %v2180_v15 = vld [vmem:[#allocation2 + $0x244] ss:$144 sps:$4 sm:$0xff]   ;;  %v2182_v22 = vld [vmem:[#allocation2 + $0x240] ss:$144 sps:$4 sm:$0xff]   ;;  %v2183_v24 = vld [vmem:[%s2573_s3 + $0x18] sm:$0xff]   ;;  %s1987_s26 = sshll.u32 %s2449_s25, 4  ;;  %s1988_s26 = int_to_ptr.vmem [resolvable:$true] %s1987_s26 }
  0x18   :  { %1253 = vmatprep.subr.bf16.mxu1 %v2176_v11  ;;  %v2499_v12 = vsub.s32 %v278_v8, %v280_v9  ;;  %v36_v16 = vld [vmem:[%s2570_s0] sm:$0xff]  ;;  %v228_v26 = vsel %vm214_vm1, %v2183_v24, 0  ;;  %v2190_v28 = vld [vmem:[#allocation2 + $0xc] ss:$144 sps:$4 sm:$0xff]   ;;  %v2188_v33 = vld [vmem:[#allocation2 + $0x8] ss:$144 sps:$4 sm:$0xff]   ;;  %p2422_p9 = scmp.lt.s32.totalorder %s1988_s26, %s1988_s26 }
  0x19   :  { %v2184_v23 = vld [vmem:[#allocation2 + $0x364] ss:$144 sps:$4 sm:$0xff]   ;;  %v275_v25 = vcombine.high %v36_v16, %v36_v16  ;;  %v2186_v27 = vld [vmem:[#allocation2 + $0x360] ss:$144 sps:$4 sm:$0xff]   ;;  %v2196_v36 = vld [vmem:[#allocation2 + $0x12c] ss:$144 sps:$4 sm:$0xff]  }
  0x1a   :  { %v282_v17 = vrot.slane %v36_v16, %v2499_v12  ;;  %v2193_v29 = vld [vmem:[#allocation2 + $0x14] ss:$144 sps:$4 sm:$0xff]   ;;  %v185_v31 = vld [vmem:[%s2571_s1] sm:$0x1]  ;;  %v2194_v40 = vld [vmem:[#allocation2 + $0x128] ss:$144 sps:$4 sm:$0xff]  }
  0x1b   :  { %v289_v30 = vrot.slane %v275_v25, %v2499_v12  ;;  %v2191_v35 = vld [vmem:[#allocation2 + $0x10] ss:$144 sps:$4 sm:$0xff]   ;;  %v2199_v38 = vld [vmem:[#allocation2 + $0x134] ss:$144 sps:$4 sm:$0xff]   ;;  %v2202_v42 = vld [vmem:[#allocation2 + $0x24c] ss:$144 sps:$4 sm:$0xff]  }
  0x1c   :  { %v290_v19 = vcombine.high %v282_v17, %v282_v17  ;;  %v298_v34 = vrot.slane %v282_v17, %v2499_v12  ;;  %v2197_v41 = vld [vmem:[#allocation2 + $0x130] ss:$144 sps:$4 sm:$0xff]   ;;  %v2205_v43 = vld [vmem:[#allocation2 + $0x254] ss:$144 sps:$4 sm:$0xff]   ;;  %v2200_v44 = vld [vmem:[#allocation2 + $0x248] ss:$144 sps:$4 sm:$0xff]  }
  0x1d   :  { %v291_v32 = vcombine.high %v289_v30, %v289_v30  ;;  %v2203_v45 = vld [vmem:[#allocation2 + $0x250] ss:$144 sps:$4 sm:$0xff]   ;;  %v2208_v46 = vld [vmem:[#allocation2 + $0x36c] ss:$144 sps:$4 sm:$0xff]   ;;  %v2211_v47 = vld [vmem:[#allocation2 + $0x374] ss:$144 sps:$4 sm:$0xff]   ;;  %v305_v57 = vrot.slane %v289_v30, %v2499_v12 }
  0x1e   :  { %2155 = vmatpush3.bf16.xpose.msra.mxu0 %v222_v13  ;;  %v312_v20 = vrot.slane %v290_v19, %v2499_v12  ;;  %v2206_v48 = vld [vmem:[#allocation2 + $0x368] ss:$144 sps:$4 sm:$0xff]   ;;  %v2209_v49 = vld [vmem:[#allocation2 + $0x370] ss:$144 sps:$4 sm:$0xff]   ;;  %v2214_v51 = vld [vmem:[#allocation2 + $0x1c] ss:$144 sps:$4 sm:$0xff]   ;;  %v320_v54 = vcombine.high %v298_v34, %v298_v34 }
  0x1f   :  { %1254 = vmatpush1.bf16.xpose.msra.mxu1 %v2178_v14  ;;  %2156 = vmatprep.subr.bf16.mxu0 %v2446_v0  ;;  %v319_v39 = vrot.slane %v291_v32, %v2499_v12  ;;  %v37_v50 = vld [vmem:[%s2570_s0 + $0x8] sm:$0xff]  ;;  %v2217_v52 = vld [vmem:[#allocation2 + $0x24] ss:$144 sps:$4 sm:$0xff]   ;;  %v2215_v58 = vld [vmem:[#allocation2 + $0x20] ss:$144 sps:$4 sm:$0xff]   ;;  %v321_v14 = vcombine.high %v305_v57, %v305_v57  ;;  %s2417_s27 = scalar_lea.vmem %s1988_s26, 32 }
  0x20   :  { %1255 = vmatprep.subr.bf16.mxu1 %v2180_v15  ;;  %1283 = vmatprep.mubr.bf16.mxu1 %v312_v20  ;;  %v322_v37 = vcombine.high %v312_v20, %v312_v20  ;;  %v331_v53 = vrot.slane %v37_v50, %v2499_v12  ;;  %v2212_v56 = vld [vmem:[#allocation2 + $0x18] ss:$144 sps:$4 sm:$0xff]   ;;  %v2220_v59 = vld [vmem:[#allocation2 + $0x13c] ss:$144 sps:$4 sm:$0xff]   ;;  %v2223_v60 = vld [vmem:[#allocation2 + $0x144] ss:$144 sps:$4 sm:$0xff]   ;;  %v324_v7 = vcombine.high %v37_v50, %v37_v50  ;;  %p2418_p8 = scmp.ne.s32.totalorder %s1988_s26, %s2417_s27  ;;  %p2423_p10 = scmp.lt.s32.totalorder %s2417_s27, %s2417_s27 }
  0x21   :  { %v323_v61 = vcombine.high %v319_v39, %v319_v39  ;;  %v2218_v63 = vld [vmem:[#allocation2 + $0x138] ss:$144 sps:$4 sm:$0xff]   ;;  %v2226_v1 = vld [vmem:[#allocation2 + $0x25c] ss:$144 sps:$4 sm:$0xff]   ;;  %v2229_v2 = vld [vmem:[#allocation2 + $0x264] ss:$144 sps:$4 sm:$0xff]  }
  0x22   :  { %v339_v55 = vcombine.high %v331_v53, %v331_v53  ;;  %v2224_v3 = vld [vmem:[#allocation2 + $0x258] ss:$144 sps:$4 sm:$0xff]   ;;  %v2227_v4 = vld [vmem:[#allocation2 + $0x260] ss:$144 sps:$4 sm:$0xff]   ;;  %v2232_v5 = vld [vmem:[#allocation2 + $0x37c] ss:$144 sps:$4 sm:$0xff]   ;;  %v338_v13 = vrot.slane %v324_v7, %v2499_v12  ;;  %v347_v17 = vrot.slane %v331_v53, %v2499_v12  ;;  %p2424_p11 = por %p2423_p10, %p2422_p9 }
  0x23   :  { %v2235_v6 = vld [vmem:[#allocation2 + $0x384] ss:$144 sps:$4 sm:$0xff]   ;;  %v2230_v8 = vld [vmem:[#allocation2 + $0x378] ss:$144 sps:$4 sm:$0xff]   ;;  %v2233_v9 = vld [vmem:[#allocation2 + $0x380] ss:$144 sps:$4 sm:$0xff]  }
  0x24   :  { %v361_v62 = vrot.slane %v339_v55, %v2499_v12  ;;  %v2238_v10 = vld [vmem:[#allocation2 + $0x2c] ss:$144 sps:$4 sm:$0xff]   ;;  %v2241_v11 = vld [vmem:[#allocation2 + $0x34] ss:$144 sps:$4 sm:$0xff]   ;;  %v340_v15 = vcombine.high %v338_v13, %v338_v13  ;;  %v2236_v16 = vld [vmem:[#allocation2 + $0x28] ss:$144 sps:$4 sm:$0xff]   ;;  %p2425_p12 = pnand %p2424_p11, %p2418_p8 }
  0x25   :  { %v2239_v18 = vld [vmem:[#allocation2 + $0x30] ss:$144 sps:$4 sm:$0xff]   ;;  %v2244_v19 = vld [vmem:[#allocation2 + $0x14c] ss:$144 sps:$4 sm:$0xff]   ;;  %v2247_v20 = vld [vmem:[#allocation2 + $0x154] ss:$144 sps:$4 sm:$0xff]  }
  0x26   :  { %2157 = vmatpush3.bf16.xpose.msra.mxu0 %v225_v21  ;;  %v371_v21 = vcombine.high %v361_v62, %v361_v62  ;;  %v2245_v24 = vld [vmem:[#allocation2 + $0x150] ss:$144 sps:$4 sm:$0xff]   ;;  %v2250_v25 = vld [vmem:[#allocation2 + $0x26c] ss:$144 sps:$4 sm:$0xff]   ;;  %v2259_v30 = vld [vmem:[#allocation2 + $0x394] ss:$144 sps:$4 sm:$0xff]  }
  0x27   :  { %1256 = vmatpush1.bf16.xpose.msra.mxu1 %v2182_v22  ;;  %2158 = vmatprep.subr.bf16.mxu0 %v2446_v0  ;;  %v2221_v0 = vld [vmem:[#allocation2 + $0x140] ss:$144 sps:$4 sm:$0xff]   ;;  %v368_v22 = vrot.slane %v340_v15, %v2499_v12  ;;  %v2273_v50 = vld [vmem:[#allocation2 + $0x278] ss:$144 sps:$4 sm:$0xff]   ;;  %v2284_v53 = vld [vmem:[#allocation2 + $0x3a4] ss:$144 sps:$4 sm:$0xff]  }
  0x28   :  { %1257 = vmatprep.subr.bf16.mxu1 %v2184_v23  ;;  %v2242_v23 = vld [vmem:[#allocation2 + $0x148] ss:$144 sps:$4 sm:$0xff]   ;;  %v38_v32 = vld [vmem:[%s2570_s0 + $0x10] sm:$0xff]  ;;  %v2299_v7 = vld [vmem:[#allocation2 + $0x28c] ss:$144 sps:$4 sm:$0xff]  }
  0x29   :  { %v2279_v55 = vld [vmem:[#allocation2 + $0x398] ss:$144 sps:$4 sm:$0xff]  }
  0x2a   :  { %v39_v15 = vld [vmem:[%s2570_s0 + $0x18] sm:$0xff] }
  0x2e   :  { %2159 = vmatpush3.bf16.xpose.msra.mxu0 %v228_v26  ;;  %v2253_v26 = vld [vmem:[#allocation2 + $0x274] ss:$144 sps:$4 sm:$0xff]  }
  0x2f   :  { %1258 = vmatpush1.bf16.xpose.msra.mxu1 %v2186_v27  ;;  %1291 = vmatprep.subr.bf16.mxu0 %v2190_v28  ;;  %v2248_v27 = vld [vmem:[#allocation2 + $0x268] ss:$144 sps:$4 sm:$0xff]   ;;  %v2251_v28 = vld [vmem:[#allocation2 + $0x270] ss:$144 sps:$4 sm:$0xff]  }
  0x30   :  { %1331 = vmatprep.subr.bf16.mxu1 %v2193_v29  ;;  %v2256_v29 = vld [vmem:[#allocation2 + $0x38c] ss:$144 sps:$4 sm:$0xff]  }
  0x35   :  { %2161 = vmatmul.mubr.msk.bf16.vlgmr.msra.gmra.mrb[0].mxu0 %vm214_vm1, %v185_v31  ;;  %v2254_v31 = vld [vmem:[#allocation2 + $0x388] ss:$144 sps:$4 sm:$0xff]  }
  0x36   :  { %1284 = vmatmul.mubr.bf16.vlgmr.msra.gmra.mrb[0].mxu1 %v298_v34  ;;  %1292 = vmatpush1.bf16.xpose.msra.mxu0 %v2188_v33  ;;  %v2257_v33 = vld [vmem:[#allocation2 + $0x390] ss:$144 sps:$4 sm:$0xff]   ;;  %v2262_v34 = vld [vmem:[#allocation2 + $0x3c] ss:$144 sps:$4 sm:$0xff]  }
  0x37   :  { %1332 = vmatpush1.bf16.xpose.msra.mxu1 %v2191_v35  ;;  %1293 = vmatprep.subr.bf16.mxu0 %v2196_v36  ;;  %v2266_v35 = vld [vmem:[#allocation2 + $0x44] ss:$144 sps:$4 sm:$0xff]   ;;  %v380_v36 = vrot.slane %v38_v32, %v2499_v12 }
  0x38   :  { %1333 = vmatprep.subr.bf16.mxu1 %v2199_v38  ;;  %1323 = vmatprep.mubr.bf16.mxu0 %v322_v37  ;;  %v369_v37 = vcombine.high %v347_v17, %v347_v17 }
  0x39   :  { %1363 = vmatprep.mubr.bf16.mxu1 %v319_v39  ;;  %v388_v38 = vcombine.high %v380_v36, %v380_v36  ;;  %v2260_v39 = vld [vmem:[#allocation2 + $0x38] ss:$144 sps:$4 sm:$0xff]  }
  0x3e   :  { %1294 = vmatpush1.bf16.xpose.msra.mxu0 %v2194_v40  ;;  %v354_v40 = vrot.slane %v338_v13, %v2499_v12  ;;  %v2308_v13 = vld [vmem:[#allocation2 + $0x3b4] ss:$144 sps:$4 sm:$0xff]  }
  0x3f   :  { %1334 = vmatpush1.bf16.xpose.msra.mxu1 %v2197_v41  ;;  %1295 = vmatprep.subr.bf16.mxu0 %v2202_v42  ;;  %v2264_v41 = vld [vmem:[#allocation2 + $0x40] ss:$144 sps:$4 sm:$0xff]   ;;  %v2269_v42 = vld [vmem:[#allocation2 + $0x15c] ss:$144 sps:$4 sm:$0xff]  }
  0x40   :  { %1335 = vmatprep.subr.bf16.mxu1 %v2205_v43  ;;  %v2272_v43 = vld [vmem:[#allocation2 + $0x164] ss:$144 sps:$4 sm:$0xff]  }
  0x46   :  { %1296 = vmatpush1.bf16.xpose.msra.mxu0 %v2200_v44  ;;  %v372_v44 = vcombine.high %v368_v22, %v368_v22 }
  0x47   :  { %1336 = vmatpush1.bf16.xpose.msra.mxu1 %v2203_v45  ;;  %1297 = vmatprep.subr.bf16.mxu0 %v2208_v46  ;;  %v410_v45 = vrot.slane %v388_v38, %v2499_v12  ;;  %v2267_v46 = vld [vmem:[#allocation2 + $0x158] ss:$144 sps:$4 sm:$0xff]  }
  0x48   :  { %1337 = vmatprep.subr.bf16.mxu1 %v2211_v47  ;;  %v2270_v47 = vld [vmem:[#allocation2 + $0x160] ss:$144 sps:$4 sm:$0xff]   ;;  %v2328_v38 = vld [vmem:[#allocation2 + $0x3b8] ss:$144 sps:$4 sm:$0xff]  }
  0x4e   :  { %1298 = vmatpush1.bf16.xpose.msra.mxu0 %v2206_v48  ;;  %v2275_v48 = vld [vmem:[#allocation2 + $0x27c] ss:$144 sps:$4 sm:$0xff]  }
  0x4f   :  { %1338 = vmatpush1.bf16.xpose.msra.mxu1 %v2209_v49  ;;  %1371 = vmatprep.subr.bf16.mxu0 %v2214_v51  ;;  %v2278_v49 = vld [vmem:[#allocation2 + $0x284] ss:$144 sps:$4 sm:$0xff]   ;;  %v2276_v51 = vld [vmem:[#allocation2 + $0x280] ss:$144 sps:$4 sm:$0xff]  }
  0x50   :  { %1411 = vmatprep.subr.bf16.mxu1 %v2217_v52  ;;  %v2281_v52 = vld [vmem:[#allocation2 + $0x39c] ss:$144 sps:$4 sm:$0xff]  }
  0x55   :  { %1324 = vmatmul.mubr.bf16.vlgmr.msra.gmra.mrb[4].mxu0 %v320_v54  ;;  %v373_v54 = vcombine.high %v38_v32, %v38_v32  ;;  %v2327_v32 = vld [vmem:[#allocation2 + $0x2a4] ss:$144 sps:$4 sm:$0xff]  }
  0x56   :  { %1372 = vmatpush1.bf16.xpose.msra.mxu0 %v2212_v56  ;;  %1364 = vmatmul.mubr.bf16.vlgmr.msra.gmra.mrb[4].mxu1 %v305_v57  ;;  %v2282_v56 = vld [vmem:[#allocation2 + $0x3a0] ss:$144 sps:$4 sm:$0xff]   ;;  %v2287_v57 = vld [vmem:[#allocation2 + $0x4c] ss:$144 sps:$4 sm:$0xff]  }
  0x57   :  { %1412 = vmatpush1.bf16.xpose.msra.mxu1 %v2215_v58  ;;  %1373 = vmatprep.subr.bf16.mxu0 %v2220_v59  ;;  %v2290_v58 = vld [vmem:[#allocation2 + $0x54] ss:$144 sps:$4 sm:$0xff]   ;;  %v387_v59 = vrot.slane %v373_v54, %v2499_v12  ;;  %v2348_v54 = vld [vmem:[#allocation2 + $0x2ac] ss:$144 sps:$4 sm:$0xff]  }
  0x58   :  { %1413 = vmatprep.subr.bf16.mxu1 %v2223_v60  ;;  %1403 = vmatprep.mubr.bf16.mxu0 %v323_v61  ;;  %v370_v60 = vcombine.high %v354_v40, %v354_v40 }
  0x59   :  { %1443 = vmatprep.mubr.bf16.mxu1 %v361_v62  ;;  %v389_v61 = vcombine.high %v387_v59, %v387_v59  ;;  %v2285_v62 = vld [vmem:[#allocation2 + $0x48] ss:$144 sps:$4 sm:$0xff]  }
  0x5e   :  { %1374 = vmatpush1.bf16.xpose.msra.mxu0 %v2218_v63  ;;  %v396_v63 = vrot.slane %v380_v36, %v2499_v12  ;;  %v2333_v36 = vld [vmem:[#allocation2 + $0x3c4] ss:$144 sps:$4 sm:$0xff]  }
  0x5f   :  { %1414 = vmatpush1.bf16.xpose.msra.mxu1 %v2221_v0  ;;  %1375 = vmatprep.subr.bf16.mxu0 %v2226_v1  ;;  %v2288_v0 = vld [vmem:[#allocation2 + $0x50] ss:$144 sps:$4 sm:$0xff]   ;;  %v2293_v1 = vld [vmem:[#allocation2 + $0x16c] ss:$144 sps:$4 sm:$0xff]  }
  0x60   :  { %1415 = vmatprep.subr.bf16.mxu1 %v2229_v2  ;;  %v2296_v2 = vld [vmem:[#allocation2 + $0x174] ss:$144 sps:$4 sm:$0xff]  }
  0x66   :  { %1376 = vmatpush1.bf16.xpose.msra.mxu0 %v2224_v3  ;;  %v420_v3 = vcombine.high %v410_v45, %v410_v45 }
  0x67   :  { %1416 = vmatpush1.bf16.xpose.msra.mxu1 %v2227_v4  ;;  %1377 = vmatprep.subr.bf16.mxu0 %v2232_v5  ;;  %v417_v4 = vrot.slane %v389_v61, %v2499_v12  ;;  %v2291_v5 = vld [vmem:[#allocation2 + $0x168] ss:$144 sps:$4 sm:$0xff]  }
  0x68   :  { %1417 = vmatprep.subr.bf16.mxu1 %v2235_v6  ;;  %v2294_v6 = vld [vmem:[#allocation2 + $0x170] ss:$144 sps:$4 sm:$0xff]  }
  0x6e   :  { %1378 = vmatpush1.bf16.xpose.msra.mxu0 %v2230_v8  ;;  %v2302_v8 = vld [vmem:[#allocation2 + $0x294] ss:$144 sps:$4 sm:$0xff]  }
  0x6f   :  { %1418 = vmatpush1.bf16.xpose.msra.mxu1 %v2233_v9  ;;  %1451 = vmatprep.subr.bf16.mxu0 %v2238_v10  ;;  %v2297_v9 = vld [vmem:[#allocation2 + $0x288] ss:$144 sps:$4 sm:$0xff]   ;;  %v2300_v10 = vld [vmem:[#allocation2 + $0x290] ss:$144 sps:$4 sm:$0xff]  }
  0x70   :  { %1491 = vmatprep.subr.bf16.mxu1 %v2241_v11  ;;  %v2305_v11 = vld [vmem:[#allocation2 + $0x3ac] ss:$144 sps:$4 sm:$0xff]  }
  0x75   :  { %1404 = vmatmul.mubr.bf16.vlgmr.msra.gmra.mrb[8].mxu0 %v321_v14  ;;  %v2303_v14 = vld [vmem:[#allocation2 + $0x3a8] ss:$144 sps:$4 sm:$0xff]  }
  0x76   :  { %1452 = vmatpush1.bf16.xpose.msra.mxu0 %v2236_v16  ;;  %1444 = vmatmul.mubr.bf16.vlgmr.msra.gmra.mrb[8].mxu1 %v347_v17  ;;  %v2306_v16 = vld [vmem:[#allocation2 + $0x3b0] ss:$144 sps:$4 sm:$0xff]   ;;  %v2311_v17 = vld [vmem:[#allocation2 + $0x5c] ss:$144 sps:$4 sm:$0xff]  }
  0x77   :  { %1492 = vmatpush1.bf16.xpose.msra.mxu1 %v2239_v18  ;;  %1453 = vmatprep.subr.bf16.mxu0 %v2244_v19  ;;  %v2315_v18 = vld [vmem:[#allocation2 + $0x64] ss:$144 sps:$4 sm:$0xff]   ;;  %v429_v19 = vrot.slane %v39_v15, %v2499_v12 }
  0x78   :  { %1493 = vmatprep.subr.bf16.mxu1 %v2247_v20  ;;  %1483 = vmatprep.mubr.bf16.mxu0 %v371_v21  ;;  %v418_v20 = vcombine.high %v396_v63, %v396_v63 }
  0x79   :  { %1523 = vmatprep.mubr.bf16.mxu1 %v368_v22  ;;  %v437_v21 = vcombine.high %v429_v19, %v429_v19  ;;  %v2309_v22 = vld [vmem:[#allocation2 + $0x58] ss:$144 sps:$4 sm:$0xff]  }
  0x7e   :  { %1454 = vmatpush1.bf16.xpose.msra.mxu0 %v2242_v23  ;;  %v403_v23 = vrot.slane %v387_v59, %v2499_v12  ;;  %v2357_v59 = vld [vmem:[#allocation2 + $0x3d4] ss:$144 sps:$4 sm:$0xff]  }
  0x7f   :  { %1494 = vmatpush1.bf16.xpose.msra.mxu1 %v2245_v24  ;;  %1455 = vmatprep.subr.bf16.mxu0 %v2250_v25  ;;  %v2313_v24 = vld [vmem:[#allocation2 + $0x60] ss:$144 sps:$4 sm:$0xff]   ;;  %v2318_v25 = vld [vmem:[#allocation2 + $0x17c] ss:$144 sps:$4 sm:$0xff]  }
  0x80   :  { %1495 = vmatprep.subr.bf16.mxu1 %v2253_v26  ;;  %v2321_v26 = vld [vmem:[#allocation2 + $0x184] ss:$144 sps:$4 sm:$0xff]  }
  0x86   :  { %1456 = vmatpush1.bf16.xpose.msra.mxu0 %v2248_v27  ;;  %v421_v27 = vcombine.high %v417_v4, %v417_v4 }
  0x87   :  { %1496 = vmatpush1.bf16.xpose.msra.mxu1 %v2251_v28  ;;  %1457 = vmatprep.subr.bf16.mxu0 %v2256_v29  ;;  %v459_v28 = vrot.slane %v437_v21, %v2499_v12  ;;  %v2316_v29 = vld [vmem:[#allocation2 + $0x178] ss:$144 sps:$4 sm:$0xff]   ;;  %v2368_v21 = vld [vmem:[#allocation2 + $0x1a0] ss:$144 sps:$4 sm:$0xff]  }
  0x88   :  { %1497 = vmatprep.subr.bf16.mxu1 %v2259_v30  ;;  %v2319_v30 = vld [vmem:[#allocation2 + $0x180] ss:$144 sps:$4 sm:$0xff]  }
  0x8e   :  { %1458 = vmatpush1.bf16.xpose.msra.mxu0 %v2254_v31  ;;  %v2324_v31 = vld [vmem:[#allocation2 + $0x29c] ss:$144 sps:$4 sm:$0xff]  }
  0x8f   :  { %1498 = vmatpush1.bf16.xpose.msra.mxu1 %v2257_v33  ;;  %1531 = vmatprep.subr.bf16.mxu0 %v2262_v34  ;;  %v2322_v33 = vld [vmem:[#allocation2 + $0x298] ss:$144 sps:$4 sm:$0xff]   ;;  %v2325_v34 = vld [vmem:[#allocation2 + $0x2a0] ss:$144 sps:$4 sm:$0xff]  }
  0x90   :  { %1571 = vmatprep.subr.bf16.mxu1 %v2266_v35  ;;  %v2330_v35 = vld [vmem:[#allocation2 + $0x3bc] ss:$144 sps:$4 sm:$0xff]  }
  0x95   :  { %1484 = vmatmul.mubr.bf16.vlgmr.msra.gmra.mrb[12].mxu0 %v369_v37  ;;  %v422_v37 = vcombine.high %v39_v15, %v39_v15  ;;  %v2362_v15 = vld [vmem:[#allocation2 + $0x80] ss:$144 sps:$4 sm:$0xff]  }
  0x96   :  { %1532 = vmatpush1.bf16.xpose.msra.mxu0 %v2260_v39  ;;  %1524 = vmatmul.mubr.bf16.vlgmr.msra.gmra.mrb[12].mxu1 %v354_v40  ;;  %v2331_v39 = vld [vmem:[#allocation2 + $0x3c0] ss:$144 sps:$4 sm:$0xff]   ;;  %v2336_v40 = vld [vmem:[#allocation2 + $0x6c] ss:$144 sps:$4 sm:$0xff]  }
  0x97   :  { %1572 = vmatpush1.bf16.xpose.msra.mxu1 %v2264_v41  ;;  %1533 = vmatprep.subr.bf16.mxu0 %v2269_v42  ;;  %v2339_v41 = vld [vmem:[#allocation2 + $0x74] ss:$144 sps:$4 sm:$0xff]   ;;  %v436_v42 = vrot.slane %v422_v37, %v2499_v12  ;;  %v2380_v37 = vld [vmem:[#allocation2 + $0x3e0] ss:$144 sps:$4 sm:$0xff]  }
  0x98   :  { %1573 = vmatprep.subr.bf16.mxu1 %v2272_v43  ;;  %1563 = vmatprep.mubr.bf16.mxu0 %v372_v44  ;;  %v419_v43 = vcombine.high %v403_v23, %v403_v23 }
  0x99   :  { %1603 = vmatprep.mubr.bf16.mxu1 %v410_v45  ;;  %v438_v44 = vcombine.high %v436_v42, %v436_v42  ;;  %v2334_v45 = vld [vmem:[#allocation2 + $0x68] ss:$144 sps:$4 sm:$0xff]  }
  0x9e   :  { %1534 = vmatpush1.bf16.xpose.msra.mxu0 %v2267_v46  ;;  %v445_v46 = vrot.slane %v429_v19, %v2499_v12 }
  0x9f   :  { %1574 = vmatpush1.bf16.xpose.msra.mxu1 %v2270_v47  ;;  %1535 = vmatprep.subr.bf16.mxu0 %v2275_v48  ;;  %v2337_v47 = vld [vmem:[#allocation2 + $0x70] ss:$144 sps:$4 sm:$0xff]   ;;  %v2342_v48 = vld [vmem:[#allocation2 + $0x18c] ss:$144 sps:$4 sm:$0xff]  }
  0xa0   :  { %1575 = vmatprep.subr.bf16.mxu1 %v2278_v49  ;;  %v2345_v49 = vld [vmem:[#allocation2 + $0x194] ss:$144 sps:$4 sm:$0xff]  }
  0xa6   :  { %1536 = vmatpush1.bf16.xpose.msra.mxu0 %v2273_v50  ;;  %v469_v50 = vcombine.high %v459_v28, %v459_v28 }
  0xa7   :  { %1576 = vmatpush1.bf16.xpose.msra.mxu1 %v2276_v51  ;;  %1537 = vmatprep.subr.bf16.mxu0 %v2281_v52  ;;  %v466_v51 = vrot.slane %v438_v44, %v2499_v12  ;;  %v2340_v52 = vld [vmem:[#allocation2 + $0x188] ss:$144 sps:$4 sm:$0xff]   ;;  %v2388_v44 = vld [vmem:[#allocation2 + $0x1ac] ss:$144 sps:$4 sm:$0xff]  }
  0xa8   :  { %1577 = vmatprep.subr.bf16.mxu1 %v2284_v53  ;;  %v2343_v53 = vld [vmem:[#allocation2 + $0x190] ss:$144 sps:$4 sm:$0xff]  }
  0xae   :  { %1538 = vmatpush1.bf16.xpose.msra.mxu0 %v2279_v55  ;;  %v2351_v55 = vld [vmem:[#allocation2 + $0x2b4] ss:$144 sps:$4 sm:$0xff]  }
  0xaf   :  { %1578 = vmatpush1.bf16.xpose.msra.mxu1 %v2282_v56  ;;  %1611 = vmatprep.subr.bf16.mxu0 %v2287_v57  ;;  %v2346_v56 = vld [vmem:[#allocation2 + $0x2a8] ss:$144 sps:$4 sm:$0xff]   ;;  %v2349_v57 = vld [vmem:[#allocation2 + $0x2b0] ss:$144 sps:$4 sm:$0xff]  }
  0xb0   :  { %1651 = vmatprep.subr.bf16.mxu1 %v2290_v58  ;;  %v2354_v58 = vld [vmem:[#allocation2 + $0x3cc] ss:$144 sps:$4 sm:$0xff]  }
  0xb5   :  { %1564 = vmatmul.mubr.bf16.vlgmr.msra.gmra.mrb[16].mxu0 %v370_v60 }
  0xb6   :  { %1612 = vmatpush1.bf16.xpose.msra.mxu0 %v2285_v62  ;;  %1604 = vmatmul.mubr.bf16.vlgmr.msra.gmra.mrb[16].mxu1 %v396_v63 }
  0xb7   :  { %1652 = vmatpush1.bf16.xpose.msra.mxu1 %v2288_v0  ;;  %1613 = vmatprep.subr.bf16.mxu0 %v2293_v1  ;;  %v2352_v1 = vld [vmem:[#allocation2 + $0x3c8] ss:$144 sps:$4 sm:$0xff]  }
  0xb8   :  { %1653 = vmatprep.subr.bf16.mxu1 %v2296_v2  ;;  %1643 = vmatprep.mubr.bf16.mxu0 %v420_v3 }
  0xb9   :  { %1683 = vmatprep.mubr.bf16.mxu1 %v417_v4  ;;  %v2355_v4 = vld [vmem:[#allocation2 + $0x3d0] ss:$144 sps:$4 sm:$0xff]  }
  0xbe   :  { %1614 = vmatpush1.bf16.xpose.msra.mxu0 %v2291_v5  ;;  %v2360_v5 = vld [vmem:[#allocation2 + $0x7c] ss:$144 sps:$4 sm:$0xff]  }
  0xbf   :  { %1654 = vmatpush1.bf16.xpose.msra.mxu1 %v2294_v6  ;;  %1615 = vmatprep.subr.bf16.mxu0 %v2299_v7  ;;  %v2364_v7 = vld [vmem:[#allocation2 + $0x84] ss:$144 sps:$4 sm:$0xff]  }
  0xc0   :  { %1655 = vmatprep.subr.bf16.mxu1 %v2302_v8 }
  0xc6   :  { %1616 = vmatpush1.bf16.xpose.msra.mxu0 %v2297_v9  ;;  %v2001_v9 = vld.sshfl [vmem:[%s2570_s0 + $0x20] sm:$0x33 pattern:$0x75316420] }
  0xc7   :  { %1656 = vmatpush1.bf16.xpose.msra.mxu1 %v2300_v10  ;;  %1617 = vmatprep.subr.bf16.mxu0 %v2305_v11  ;;  %v467_v10 = vcombine.high %v445_v46, %v445_v46  ;;  %v478_v11 = vcombine.high %v2001_v9, %v2001_v9 }
  0xc8   :  { %1657 = vmatprep.subr.bf16.mxu1 %v2308_v13  ;;  %v2358_v13 = vld [vmem:[#allocation2 + $0x78] ss:$144 sps:$4 sm:$0xff]  }
  0xc9   :  { %v492_v19 = vrot.slane %v478_v11, %v2499_v12 }
  0xce   :  { %1618 = vmatpush1.bf16.xpose.msra.mxu0 %v2303_v14  ;;  %v452_v14 = vrot.slane %v436_v42, %v2499_v12  ;;  %v2383_v42 = vld [vmem:[#allocation2 + $0x88] ss:$144 sps:$4 sm:$0xff]  }
  0xcf   :  { %1658 = vmatpush1.bf16.xpose.msra.mxu1 %v2306_v16  ;;  %1691 = vmatprep.subr.bf16.mxu0 %v2311_v17  ;;  %v2367_v16 = vld [vmem:[#allocation2 + $0x19c] ss:$144 sps:$4 sm:$0xff]   ;;  %v2370_v17 = vld [vmem:[#allocation2 + $0x1a4] ss:$144 sps:$4 sm:$0xff]  }
  0xd0   :  { %1731 = vmatprep.subr.bf16.mxu1 %v2315_v18  ;;  %v470_v18 = vcombine.high %v466_v51, %v466_v51 }
  0xd5   :  { %1644 = vmatmul.mubr.bf16.vlgmr.msra.gmra.mrb[20].mxu0 %v418_v20  ;;  %v2365_v20 = vld [vmem:[#allocation2 + $0x198] ss:$144 sps:$4 sm:$0xff]  }
  0xd6   :  { %1692 = vmatpush1.bf16.xpose.msra.mxu0 %v2309_v22  ;;  %1684 = vmatmul.mubr.bf16.vlgmr.msra.gmra.mrb[20].mxu1 %v403_v23  ;;  %v2373_v22 = vld [vmem:[#allocation2 + $0x2bc] ss:$144 sps:$4 sm:$0xff]   ;;  %v2376_v23 = vld [vmem:[#allocation2 + $0x2c4] ss:$144 sps:$4 sm:$0xff]  }
  0xd7   :  { %1732 = vmatpush1.bf16.xpose.msra.mxu1 %v2313_v24  ;;  %1693 = vmatprep.subr.bf16.mxu0 %v2318_v25  ;;  %v2371_v24 = vld [vmem:[#allocation2 + $0x2b8] ss:$144 sps:$4 sm:$0xff]   ;;  %v2374_v25 = vld [vmem:[#allocation2 + $0x2c0] ss:$144 sps:$4 sm:$0xff]  }
  0xd8   :  { %1733 = vmatprep.subr.bf16.mxu1 %v2321_v26  ;;  %1723 = vmatprep.mubr.bf16.mxu0 %v421_v27  ;;  %v2379_v26 = vld [vmem:[#allocation2 + $0x3dc] ss:$144 sps:$4 sm:$0xff]   ;;  %v2382_v27 = vld [vmem:[#allocation2 + $0x3e4] ss:$144 sps:$4 sm:$0xff]  }
  0xd9   :  { %1763 = vmatprep.mubr.bf16.mxu1 %v459_v28 }
  0xde   :  { %1694 = vmatpush1.bf16.xpose.msra.mxu0 %v2316_v29 }
  0xdf   :  { %1734 = vmatpush1.bf16.xpose.msra.mxu1 %v2319_v30  ;;  %1695 = vmatprep.subr.bf16.mxu0 %v2324_v31 }
  0xe0   :  { %1735 = vmatprep.subr.bf16.mxu1 %v2327_v32 }
  0xe6   :  { %1696 = vmatpush1.bf16.xpose.msra.mxu0 %v2322_v33  ;;  %v2377_v33 = vld [vmem:[#allocation2 + $0x3d8] ss:$144 sps:$4 sm:$0xff]  }
  0xe7   :  { %1736 = vmatpush1.bf16.xpose.msra.mxu1 %v2325_v34  ;;  %1697 = vmatprep.subr.bf16.mxu0 %v2330_v35 }
  0xe8   :  { %1737 = vmatprep.subr.bf16.mxu1 %v2333_v36 }
  0xee   :  { %1698 = vmatpush1.bf16.xpose.msra.mxu0 %v2328_v38  ;;  %v2385_v38 = vld [vmem:[#allocation2 + $0x8c] ss:$144 sps:$4 sm:$0xff]  }
  0xef   :  { %1738 = vmatpush1.bf16.xpose.msra.mxu1 %v2331_v39  ;;  %1771 = vmatprep.subr.bf16.mxu0 %v2336_v40 }
  0xf0   :  { %1811 = vmatprep.subr.bf16.mxu1 %v2339_v41  ;;  %v468_v41 = vcombine.high %v452_v14, %v452_v14 }
  0xf5   :  { %1724 = vmatmul.mubr.bf16.vlgmr.msra.gmra.mrb[24].mxu0 %v419_v43  ;;  %v485_v43 = vrot.slane %v2001_v9, %v2499_v12 }
  0xf6   :  { %1772 = vmatpush1.bf16.xpose.msra.mxu0 %v2334_v45  ;;  %1764 = vmatmul.mubr.bf16.vlgmr.msra.gmra.mrb[24].mxu1 %v445_v46  ;;  %v494_v45 = vcombine.high %v492_v19, %v492_v19  ;;  %v2386_v46 = vld [vmem:[#allocation2 + $0x1a8] ss:$144 sps:$4 sm:$0xff]  }
  0xf7   :  { %1812 = vmatpush1.bf16.xpose.msra.mxu1 %v2337_v47  ;;  %1773 = vmatprep.subr.bf16.mxu0 %v2342_v48  ;;  %v2391_v47 = vld [vmem:[#allocation2 + $0x2cc] ss:$144 sps:$4 sm:$0xff]   ;;  %v2389_v48 = vld [vmem:[#allocation2 + $0x2c8] ss:$144 sps:$4 sm:$0xff]  }
  0xf8   :  { %1813 = vmatprep.subr.bf16.mxu1 %v2345_v49  ;;  %1803 = vmatprep.mubr.bf16.mxu0 %v469_v50  ;;  %v2394_v49 = vld [vmem:[#allocation2 + $0x3ec] ss:$144 sps:$4 sm:$0xff]  }
  0xf9   :  { %1843 = vmatprep.mubr.bf16.mxu1 %v466_v51 }
  0xfe   :  { %1774 = vmatpush1.bf16.xpose.msra.mxu0 %v2340_v52 }
  0xff   :  { %1814 = vmatpush1.bf16.xpose.msra.mxu1 %v2343_v53  ;;  %1775 = vmatprep.subr.bf16.mxu0 %v2348_v54  ;;  %v2392_v54 = vld [vmem:[#allocation2 + $0x3e8] ss:$144 sps:$4 sm:$0xff]  }
 0x100   :  { %1815 = vmatprep.subr.bf16.mxu1 %v2351_v55 }
 0x106   :  { %1776 = vmatpush1.bf16.xpose.msra.mxu0 %v2346_v56 }
 0x107   :  { %1816 = vmatpush1.bf16.xpose.msra.mxu1 %v2349_v57  ;;  %1777 = vmatprep.subr.bf16.mxu0 %v2354_v58 }
 0x108   :  { %v264_v60 = vpop.f32.mrb[0].mxu0  ;;  %1817 = vmatprep.subr.bf16.mxu1 %v2357_v59 }
 0x109   :  { %v2162_v61 = vpop.f32.mrb[1].mxu0  ;;  %v1285_v62 = vpop.f32.mrb[0].mxu1 }
 0x10a   :  { %v1286_v63 = vadd.f32 %v1285_v62, %v264_v60  ;;  %v267_v0 = vpop.f32.mrb[2].mxu0  ;;  %v1287_v2 = vpop.f32.mrb[1].mxu1  ;;  %v493_v60 = vcombine.high %v485_v43, %v485_v43 }
 0x10b   :  { %v2163_v3 = vpop.f32.mrb[3].mxu0  ;;  %v1288_v6 = vpop.f32.mrb[2].mxu1 }
 0x10c   :  { %v1289_v8 = vpop.f32.mrb[3].mxu1 }
 0x10e   :  { %1778 = vmatpush1.bf16.xpose.msra.mxu0 %v2352_v1 }
 0x10f   :  { %1818 = vmatpush1.bf16.xpose.msra.mxu1 %v2355_v4  ;;  %1851 = vmatprep.subr.bf16.mxu0 %v2360_v5 }
 0x110   :  { %1891 = vmatprep.subr.bf16.mxu1 %v2364_v7 }
 0x115   :  { %1804 = vmatmul.mubr.bf16.vlgmr.msra.gmra.mrb[28].mxu0 %v467_v10 }
 0x116   :  { %1852 = vmatpush1.bf16.xpose.msra.mxu0 %v2358_v13  ;;  %1844 = vmatmul.mubr.bf16.vlgmr.msra.gmra.mrb[28].mxu1 %v452_v14 }
 0x117   :  { %1892 = vmatpush1.bf16.xpose.msra.mxu1 %v2362_v15  ;;  %1853 = vmatprep.subr.bf16.mxu0 %v2367_v16 }
 0x118   :  { %1893 = vmatprep.subr.bf16.mxu1 %v2370_v17  ;;  %1883 = vmatprep.mubr.bf16.mxu0 %v470_v18 }
 0x119   :  { %1923 = vmatprep.mubr.bf16.mxu1 %v492_v19 }
 0x11e   :  { %1854 = vmatpush1.bf16.xpose.msra.mxu0 %v2365_v20 }
 0x11f   :  { %1894 = vmatpush1.bf16.xpose.msra.mxu1 %v2368_v21  ;;  %1855 = vmatprep.subr.bf16.mxu0 %v2373_v22 }
 0x120   :  { %1895 = vmatprep.subr.bf16.mxu1 %v2376_v23 }
 0x126   :  { %1856 = vmatpush1.bf16.xpose.msra.mxu0 %v2371_v24 }
 0x127   :  { %1896 = vmatpush1.bf16.xpose.msra.mxu1 %v2374_v25  ;;  %1857 = vmatprep.subr.bf16.mxu0 %v2379_v26 }
 0x128   :  { %v1325_v28 = vpop.f32.mrb[4].mxu0  ;;  %1897 = vmatprep.subr.bf16.mxu1 %v2382_v27 }
 0x129   :  { %v1326_v29 = vadd.f32 %v1325_v28, %v1286_v63  ;;  %v1327_v30 = vpop.f32.mrb[5].mxu0  ;;  %v1365_v31 = vpop.f32.mrb[4].mxu1 }
 0x12a   :  { %v1328_v32 = vpop.f32.mrb[6].mxu0  ;;  %v1367_v34 = vpop.f32.mrb[5].mxu1 }
 0x12b   :  { %v1366_v35 = vadd.f32 %v1365_v31, %v1326_v29  ;;  %v1329_v36 = vpop.f32.mrb[7].mxu0  ;;  %v1368_v39 = vpop.f32.mrb[6].mxu1 }
 0x12c   :  { %v1369_v40 = vpop.f32.mrb[7].mxu1 }
 0x12e   :  { %1858 = vmatpush1.bf16.xpose.msra.mxu0 %v2377_v33 }
 0x12f   :  { %1898 = vmatpush1.bf16.xpose.msra.mxu1 %v2380_v37  ;;  %1931 = vmatprep.subr.bf16.mxu0 %v2385_v38 }
 0x135   :  { %1884 = vmatmul.mubr.bf16.vlgmr.msra.gmra.mrb[32].mxu0 %v468_v41 }
 0x136   :  { %1932 = vmatpush1.bf16.xpose.msra.mxu0 %v2383_v42  ;;  %1924 = vmatmul.mubr.bf16.vlgmr.msra.gmra.mrb[32].mxu1 %v485_v43 }
 0x137   :  { %1933 = vmatprep.subr.bf16.mxu0 %v2388_v44  ;;  %1963 = vmatprep.mubr.bf16.mxu0 %v494_v45 }
 0x13e   :  { %1934 = vmatpush1.bf16.xpose.msra.mxu0 %v2386_v46 }
 0x13f   :  { %1935 = vmatprep.subr.bf16.mxu0 %v2391_v47 }
 0x146   :  { %1936 = vmatpush1.bf16.xpose.msra.mxu0 %v2389_v48 }
 0x147   :  { %1937 = vmatprep.subr.bf16.mxu0 %v2394_v49 }
 0x148   :  { %v1405_v50 = vpop.f32.mrb[8].mxu0 }
 0x149   :  { %v1406_v51 = vadd.f32 %v1405_v50, %v1366_v35  ;;  %v1407_v52 = vpop.f32.mrb[9].mxu0  ;;  %v1445_v53 = vpop.f32.mrb[8].mxu1 }
 0x14a   :  { %v1408_v12 = vpop.f32.mrb[10].mxu0  ;;  %v1447_v55 = vpop.f32.mrb[9].mxu1 }
 0x14b   :  { %v1446_v56 = vadd.f32 %v1445_v53, %v1406_v51  ;;  %v1409_v57 = vpop.f32.mrb[11].mxu0  ;;  %v1448_v58 = vpop.f32.mrb[10].mxu1 }
 0x14c   :  { %v1449_v59 = vpop.f32.mrb[11].mxu1  ;;  %v2146_v58 = vld [vmem:[%s2574_s4] ss:$0 sm:$0xff] }
 0x14e   :  { %1938 = vmatpush1.bf16.xpose.msra.mxu0 %v2392_v54 }
 0x155   :  { %1964 = vmatmul.mubr.bf16.vlgmr.msra.gmra.mrb[36].mxu0 %v493_v60 }
 0x168   :  { %v1485_v61 = vpop.f32.mrb[12].mxu0 }
 0x169   :  { %v1486_v62 = vadd.f32 %v1485_v61, %v1446_v56  ;;  %v1487_v63 = vpop.f32.mrb[13].mxu0  ;;  %v1525_v0 = vpop.f32.mrb[12].mxu1 }
 0x16a   :  { %v1488_v1 = vpop.f32.mrb[14].mxu0  ;;  %v1527_v2 = vpop.f32.mrb[13].mxu1 }
 0x16b   :  { %v1526_v3 = vadd.f32 %v1525_v0, %v1486_v62  ;;  %v1489_v4 = vpop.f32.mrb[15].mxu0  ;;  %v1528_v5 = vpop.f32.mrb[14].mxu1 }
 0x16c   :  { %v1529_v6 = vpop.f32.mrb[15].mxu1 }
 0x188   :  { %v1565_v7 = vpop.f32.mrb[16].mxu0 }
 0x189   :  { %v1566_v8 = vadd.f32 %v1565_v7, %v1526_v3  ;;  %v1567_v9 = vpop.f32.mrb[17].mxu0  ;;  %v1605_v10 = vpop.f32.mrb[16].mxu1 }
 0x18a   :  { %v1568_v11 = vpop.f32.mrb[18].mxu0  ;;  %v1607_v13 = vpop.f32.mrb[17].mxu1 }
 0x18b   :  { %v1606_v14 = vadd.f32 %v1605_v10, %v1566_v8  ;;  %v1569_v15 = vpop.f32.mrb[19].mxu0  ;;  %v1608_v16 = vpop.f32.mrb[18].mxu1 }
 0x18c   :  { %v1609_v17 = vpop.f32.mrb[19].mxu1 }
 0x1a8   :  { %v1645_v18 = vpop.f32.mrb[20].mxu0 }
 0x1a9   :  { %v1646_v19 = vadd.f32 %v1645_v18, %v1606_v14  ;;  %v1647_v20 = vpop.f32.mrb[21].mxu0  ;;  %v1685_v21 = vpop.f32.mrb[20].mxu1 }
 0x1aa   :  { %v1648_v22 = vpop.f32.mrb[22].mxu0  ;;  %v1687_v23 = vpop.f32.mrb[21].mxu1 }
 0x1ab   :  { %v1686_v24 = vadd.f32 %v1685_v21, %v1646_v19  ;;  %v1649_v25 = vpop.f32.mrb[23].mxu0  ;;  %v1688_v26 = vpop.f32.mrb[22].mxu1 }
 0x1ac   :  { %v1689_v27 = vpop.f32.mrb[23].mxu1 }
 0x1c8   :  { %v1725_v28 = vpop.f32.mrb[24].mxu0 }
 0x1c9   :  { %v1726_v29 = vadd.f32 %v1725_v28, %v1686_v24  ;;  %v1727_v30 = vpop.f32.mrb[25].mxu0  ;;  %v1765_v31 = vpop.f32.mrb[24].mxu1 }
 0x1ca   :  { %v1728_v32 = vpop.f32.mrb[26].mxu0  ;;  %v1767_v33 = vpop.f32.mrb[25].mxu1 }
 0x1cb   :  { %v1766_v34 = vadd.f32 %v1765_v31, %v1726_v29  ;;  %v1729_v35 = vpop.f32.mrb[27].mxu0  ;;  %v1768_v36 = vpop.f32.mrb[26].mxu1 }
 0x1cc   :  { %v1769_v37 = vpop.f32.mrb[27].mxu1 }
 0x1e8   :  { %v1805_v38 = vpop.f32.mrb[28].mxu0 }
 0x1e9   :  { %v1806_v39 = vadd.f32 %v1805_v38, %v1766_v34  ;;  %v1807_v40 = vpop.f32.mrb[29].mxu0  ;;  %v1845_v41 = vpop.f32.mrb[28].mxu1 }
 0x1ea   :  { %v1808_v42 = vpop.f32.mrb[30].mxu0  ;;  %v1847_v43 = vpop.f32.mrb[29].mxu1 }
 0x1eb   :  { %v1846_v44 = vadd.f32 %v1845_v41, %v1806_v39  ;;  %v1809_v45 = vpop.f32.mrb[31].mxu0  ;;  %v1848_v46 = vpop.f32.mrb[30].mxu1 }
 0x1ec   :  { %v1849_v47 = vpop.f32.mrb[31].mxu1 }
 0x208   :  { %v1885_v48 = vpop.f32.mrb[32].mxu0 }
 0x209   :  { %v1886_v49 = vadd.f32 %v1885_v48, %v1846_v44  ;;  %v1887_v50 = vpop.f32.mrb[33].mxu0  ;;  %v1925_v51 = vpop.f32.mrb[32].mxu1 }
 0x20a   :  { %v1888_v52 = vpop.f32.mrb[34].mxu0  ;;  %v1927_v53 = vpop.f32.mrb[33].mxu1 }
 0x20b   :  { %v1926_v12 = vadd.f32 %v1925_v51, %v1886_v49  ;;  %v1889_v54 = vpop.f32.mrb[35].mxu0  ;;  %v1928_v55 = vpop.f32.mrb[34].mxu1 }
 0x20c   :  { %v1929_v56 = vpop.f32.mrb[35].mxu1 }
 0x228   :  { %v1965_v57 = vpop.f32.mrb[36].mxu0 }
 0x229   :  { %v1966_v59 = vadd.f32 %v1965_v57, %v1926_v12  ;;  %v1967_v60 = vpop.f32.mrb[37].mxu0 }
 0x22a   :  { %v1968_v61 = vpop.f32.mrb[38].mxu0 }
 0x22b   :  { %v1978_v62 = vadd.f32 %v2146_v58, %v1966_v59  ;;  %v1969_v63 = vpop.f32.mrb[39].mxu0 }
 0x22d   :  { %1980 = vst.msk [vmem:[#allocation5] sm:$0x3] %vm1979_vm2, %v1978_v62 }
 0x22e   :  { %2428 = shalt.err (!%p2425_p12)
}
 0x22f   :  { %s2429_s4 = scalar_lea.hbm %s2575_s5, 32 }
 0x230   :  { %p2430_p13 = scmp.ne.s32.totalorder %s2575_s5, %s2429_s4  ;;  %p2433_p0 = scmp.lt.u32.totalorder %s2429_s4, %s2575_s5 }
 0x232   :  { %p2435_p1 = pnand %p2433_p0, %p2430_p13 }
 0x234   :  { %2438 = shalt.err (!%p2435_p1)
}
 0x235   :  { %1990 = dma.vmem_to_hbm [thread:$0]  %s1988_s26, 32, %s2575_s5, [#allocation4]  }
 0x236   :  { %2441 = dma.done.wait [#allocation4], 32  }
 0x237   :  { %2442 = vsyncadd [#allocation4], 4294967264 }
 0x238   :  { %1994 = vsyncpa [#allocation3], 1 }
 0x239   :  { %1995 = vsyncpa [#allocation4], 1 }

</bundles_post_ra>
